<compile_context>
chip_gen: v7x
topology: tpu7x:2x2x1
jax: 0.10.0
libtpu: 0.0.40
codegen_flags: <defaults>
</compile_context>

<pallas_src>
import jax
import jax.numpy as jnp
from jax import lax
from jax.experimental import pallas as pl
from jax.experimental.pallas import tpu as pltpu


def _upsample_conv_kernel(x_c_ref, x_t_ref, x_b_ref, w_ref, b_ref, o_ref):
    # x_c_ref: (1, TH, W, C) bf16   input rows [i*TH, i*TH+TH)
    # x_t_ref: (1, 1,  W, C) bf16   input row  i*TH-1 (clamped; zeroed when i==0)
    # x_b_ref: (1, 1,  W, C) bf16   input row  i*TH+TH (clamped; zeroed when last)
    # w_ref:   (16, C, C)    bf16   folded weights, index 8*p + 4*a + tap
    #                               tap: 0=left(q0,b0) 1=center(q0,b1) 2=center(q1,b0) 3=right(q1,b1)
    # b_ref:   (1, C)        f32
    # o_ref:   (1, TH, 2, W, 2C)    interleaved output rows (row-major == (2TH, 2W, C))
    i = pl.program_id(1)
    last = pl.num_programs(1) - 1

    xc = x_c_ref[0]                                   # (TH, W, C)
    TH, W, C = xc.shape
    top_raw = x_t_ref[0, 0]
    bot_raw = x_b_ref[0, 0]
    top = jnp.where(i > 0, top_raw, jnp.zeros_like(top_raw))      # zero-pad at top image border
    bot = jnp.where(i < last, bot_raw, jnp.zeros_like(bot_raw))   # zero-pad at bottom image border
    if TH > 1:
        x_up = jnp.concatenate([top[None], xc[:-1]], axis=0)      # rows r-1
        x_dn = jnp.concatenate([xc[1:], bot[None]], axis=0)       # rows r+1
    else:
        x_up, x_dn = top[None], bot[None]

    bias = b_ref[0].astype(jnp.float32)[None, None, :]            # (1, 1, C)
    zcol = jnp.zeros((TH, 1, C), jnp.float32)

    def mm(x, w):  # (TH, W, C) x (C, C) -> (TH, W, C) f32 on the MXU
        return lax.dot_general(x, w, dimension_numbers=(((2,), (0,)), ((), ())),
                               preferred_element_type=jnp.float32)

    xrow = (x_up, xc, xc, x_dn)                       # indexed by 2*p + a
    for p in range(2):
        x0, x1 = xrow[2 * p], xrow[2 * p + 1]
        base = 8 * p
        zl = mm(x0, w_ref[base + 0]) + mm(x1, w_ref[base + 4])    # needs input col j-1 -> q=0
        z0 = mm(x0, w_ref[base + 1]) + mm(x1, w_ref[base + 5])    # input col j         -> q=0
        z1 = mm(x0, w_ref[base + 2]) + mm(x1, w_ref[base + 6])    # input col j         -> q=1
        zr = mm(x0, w_ref[base + 3]) + mm(x1, w_ref[base + 7])    # needs input col j+1 -> q=1
        # column shift with zero at the image border (left / right padding)
        q0 = z0 + jnp.concatenate([zcol, zl[:, :-1, :]], axis=1) + bias
        q1 = z1 + jnp.concatenate([zr[:, 1:, :], zcol], axis=1) + bias
        o_ref[0, :, p, :, 0:C] = q0.astype(o_ref.dtype)
        o_ref[0, :, p, :, C:2 * C] = q1.astype(o_ref.dtype)


def _vmem_capacity_bytes():
    try:
        return int(pltpu.get_tpu_info().vmem_capacity_bytes)
    except Exception:
        return 64 << 20   # safe for v5e/v6e/v7x


def _pick_row_tile(H, W, C, n_batch, out_bytes, budget_bytes):
    # Per tile-row bytes while one grid step is in flight:
    #   input tile bf16 x2 buffers (4) + in-kernel x_up/x_dn copies (4)
    #   + output tile (4 output pixels / input pixel) x2 buffers + ~8 f32 temps (32)
    per_row = W * C * (4 + 4 + 8 * out_bytes + 32)
    divs = [d for d in range(1, H + 1) if H % d == 0]
    fits = [d for d in divs if d * per_row <= budget_bytes] or [1]
    th = max(fits)
    # keep at least 2 grid steps so both v7x TensorCores get work
    if n_batch * (H // th) < 2:
        multi = [d for d in fits if H // d >= 2]
        if multi:
            th = max(multi)
    return th


def upsamples_forward_nhwc(x_nhwc, weight, bias, *, row_tile=None, out_dtype=None):
    """nearest-2x upsample + Conv2d(C, C, 3, 1, 1) on an NHWC input (no layout passes)."""
    N, H, W, C = x_nhwc.shape
    assert weight.shape == (C, C, 3, 3) and bias.shape == (C,)
    out_dtype = jnp.dtype(out_dtype) if out_dtype is not None else x_nhwc.dtype

    x = x_nhwc.astype(jnp.bfloat16)

    # Fold the nearest-2x upsample into the conv: per (row-parity p, row-tap a, col-tap).
    w_hwio = jnp.transpose(weight, (2, 3, 1, 0))          # (kh, kw, Cin, Cout)
    row_groups = (((0,), (1, 2)), ((0, 1), (2,)))         # [p][a] -> kh set
    col_taps = ((0,), (1, 2), (0, 1), (2,))               # [tap]  -> kw set
    wf = jnp.stack([sum(w_hwio[kh, kw]
                        for kh in row_groups[p][a] for kw in col_taps[t])
                    for p in range(2) for a in range(2) for t in range(4)])
    wf = wf.astype(jnp.bfloat16)                          # (16, C, C)
    b2d = bias.astype(jnp.float32).reshape(1, C)

    cap = _vmem_capacity_bytes()
    vmem_limit = max(32 << 20, min(cap * 3 // 4, 100 << 20))
    out_bytes = jnp.dtype(out_dtype).itemsize
    TH = row_tile if row_tile is not None else _pick_row_tile(
        H, W, C, N, out_bytes, vmem_limit // 2)
    assert H % TH == 0, f"row_tile {TH} must divide H={H}"
    grid = (N, H // TH)

    out5 = pl.pallas_call(
        _upsample_conv_kernel,
        out_shape=jax.ShapeDtypeStruct((N, H, 2, W, 2 * C), out_dtype),
        grid_spec=pltpu.PrefetchScalarGridSpec(
            num_scalar_prefetch=0,
            grid=grid,
            in_specs=[
                # main row tile (unpadded input)
                pl.BlockSpec((1, TH, W, C), lambda n, i: (n, i, 0, 0)),
                # 1-row halos above/below, clamped at the image border (zeroed in-kernel)
                pl.BlockSpec((1, 1, W, C),
                             lambda n, i: (n, jnp.maximum(i * TH - 1, 0), 0, 0)),
                pl.BlockSpec((1, 1, W, C),
                             lambda n, i: (n, jnp.minimum((i + 1) * TH, H - 1), 0, 0)),
                # folded weights / bias stay resident across the grid
                pl.BlockSpec((16, C, C), lambda n, i: (0, 0, 0)),
                pl.BlockSpec((1, C), lambda n, i: (0, 0)),
            ],
            out_specs=pl.BlockSpec((1, TH, 2, W, 2 * C),
                                   lambda n, i: (n, i, 0, 0, 0)),
        ),
        compiler_params=pltpu.CompilerParams(
            dimension_semantics=("parallel", "parallel"),
            vmem_limit_bytes=vmem_limit),
    )(x, x, x, wf, b2d)

    # (N, H, 2, W, 2C) is row-major identical to the interleaved NHWC output.
    return out5.reshape(N, 2 * H, 2 * W, C)


def upsamples_forward(x_nchw, time_emb, weight, bias, *, row_tile=None, out_dtype=None):
    """PyTorch UpSamples.forward. x_nchw: (N, C, H, W); returns (N, C, 2H, 2W)."""
    del time_emb  # unused in the PyTorch forward as well
    N, C, H, W = x_nchw.shape
    # Single input-layout pass (NCHW->NHWC, fused with the bf16 cast by XLA).
    # Keeping the surrounding model NHWC (upsamples_forward_nhwc) removes both transposes.
    x_nhwc = jnp.transpose(x_nchw, (0, 2, 3, 1))
    out_nhwc = upsamples_forward_nhwc(x_nhwc, weight, bias, row_tile=row_tile,
                                      out_dtype=out_dtype or x_nchw.dtype)
    return jnp.transpose(out_nhwc, (0, 3, 1, 2))


def _reference(x_nchw, weight, bias):
    # Pure-JAX f32 reference: nearest 2x upsample + NCHW conv.
    u = jnp.repeat(jnp.repeat(x_nchw, 2, axis=2), 2, axis=3)
    out = lax.conv_general_dilated(
        u, weight, window_strides=(1, 1), padding=((1, 1), (1, 1)),
        dimension_numbers=("NCHW", "OIHW", "NCHW"))
    return out + bias[None, :, None, None]


if __name__ == "__main__":
    key = jax.random.PRNGKey(0)
    k1, k2, k3, k4 = jax.random.split(key, 4)

    N, C, H, W = 2, 4, 16, 16
    x = jax.random.normal(k1, (N, C, H, W), jnp.float32)
    time_emb = jax.random.normal(k2, (N, 32), jnp.float32)  # unused (as in PyTorch)

    # Deterministic Conv2d-style init (uniform in +-1/sqrt(fan_in)).
    fan_in = C * 3 * 3
    bound = 1.0 / (fan_in ** 0.5)
    weight = jax.random.uniform(k3, (C, C, 3, 3), jnp.float32, -bound, bound)
    bias = jax.random.uniform(k4, (C,), jnp.float32, -bound, bound)

    fwd = jax.jit(upsamples_forward, static_argnames=("row_tile", "out_dtype"))

    out_auto = jax.block_until_ready(fwd(x, time_emb, weight, bias))          # auto row tile
    out_tiled = jax.block_until_ready(fwd(x, time_emb, weight, bias, row_tile=8))  # halo path

    assert out_auto.shape == (N, C, 2 * H, 2 * W), out_auto.shape
    assert out_tiled.shape == (N, C, 2 * H, 2 * W), out_tiled.shape

    ref = _reference(x, weight, bias)
    # bf16 MXU inputs with f32 accumulation -> ~1e-2-level difference vs f32 reference.
    assert jnp.allclose(out_auto, ref, atol=5e-2, rtol=5e-2), "auto-tile mismatch vs reference"
    assert jnp.allclose(out_tiled, ref, atol=5e-2, rtol=5e-2), "row-tile mismatch vs reference"

    print("KERNEL_OK")
</pallas_src>

<mosaic_0001>
module attributes {stable_mosaic.version = 11 : i64} {
  func.func @_upsample_conv_kernel(%arg0: i32, %arg1: i32, %arg2: memref<1x16x16x4xbf16, #tpu.memory_space<vmem>>, %arg3: memref<1x1x16x4xbf16, #tpu.memory_space<vmem>>, %arg4: memref<1x1x16x4xbf16, #tpu.memory_space<vmem>>, %arg5: memref<16x4x4xbf16, #tpu.memory_space<vmem>>, %arg6: memref<1x4xf32, #tpu.memory_space<vmem>>, %arg7: memref<1x16x2x16x8xf32, #tpu.memory_space<vmem>>) attributes {dimension_semantics = [#tpu.dimension_semantics<parallel>, #tpu.dimension_semantics<parallel>], iteration_bounds = array<i64: 2, 1>, scalar_prefetch = 0 : i64, scratch_operands = 0 : i64, tpu.core_type = #tpu.core_type<tc>, window_params = [{transform_indices = @transform_0, window_bounds = array<i64: 1, 16, 16, 4>}, {transform_indices = @transform_1, window_bounds = array<i64: 1, 1, 16, 4>}, {transform_indices = @transform_2, window_bounds = array<i64: 1, 1, 16, 4>}, {pipeline_mode = #tpu.pipeline_mode<synchronous>, transform_indices = @transform_3, window_bounds = array<i64: 16, 4, 4>}, {pipeline_mode = #tpu.pipeline_mode<synchronous>, transform_indices = @transform_4, window_bounds = array<i64: 1, 4>}, {transform_indices = @transform_5, window_bounds = array<i64: 1, 16, 2, 16, 8>}]} {
    %c0 = arith.constant 0 : index
    %c0_0 = arith.constant 0 : index
    %c0_1 = arith.constant 0 : index
    %c0_2 = arith.constant 0 : index
    %0 = vector.load %arg2[%c0, %c0_0, %c0_1, %c0_2] : memref<1x16x16x4xbf16, #tpu.memory_space<vmem>>, vector<1x16x16x4xbf16>
    %1 = vector.shape_cast %0 : vector<1x16x16x4xbf16> to vector<16x16x4xbf16>
    %c0_3 = arith.constant 0 : index
    %c0_4 = arith.constant 0 : index
    %c0_5 = arith.constant 0 : index
    %c0_6 = arith.constant 0 : index
    %2 = vector.load %arg3[%c0_3, %c0_4, %c0_5, %c0_6] : memref<1x1x16x4xbf16, #tpu.memory_space<vmem>>, vector<1x1x16x4xbf16>
    %3 = vector.shape_cast %2 : vector<1x1x16x4xbf16> to vector<16x4xbf16>
    %c0_7 = arith.constant 0 : index
    %c0_8 = arith.constant 0 : index
    %c0_9 = arith.constant 0 : index
    %c0_10 = arith.constant 0 : index
    %4 = vector.load %arg4[%c0_7, %c0_8, %c0_9, %c0_10] : memref<1x1x16x4xbf16, #tpu.memory_space<vmem>>, vector<1x1x16x4xbf16>
    %5 = vector.shape_cast %4 : vector<1x1x16x4xbf16> to vector<16x4xbf16>
    %c0_i32 = arith.constant 0 : i32
    %6 = arith.cmpi sgt, %arg1, %c0_i32 : i32
    %cst = arith.constant 0.000000e+00 : bf16
    %7 = vector.broadcast %cst : bf16 to vector<16x4xbf16>
    %8 = arith.select %6, %3, %7 : vector<16x4xbf16>
    %c0_i32_11 = arith.constant 0 : i32
    %9 = arith.cmpi slt, %arg1, %c0_i32_11 : i32
    %cst_12 = arith.constant 0.000000e+00 : bf16
    %10 = vector.broadcast %cst_12 : bf16 to vector<16x4xbf16>
    %11 = arith.select %9, %5, %10 : vector<16x4xbf16>
    %12 = vector.shape_cast %8 : vector<16x4xbf16> to vector<1x16x4xbf16>
    %13 = vector.extract_strided_slice %1 {offsets = [0, 0, 0], sizes = [15, 16, 4], strides = [1, 1, 1]} : vector<16x16x4xbf16> to vector<15x16x4xbf16>
    %14 = tpu.concatenate %12, %13 in 0 : vector<1x16x4xbf16>, vector<15x16x4xbf16> -> vector<16x16x4xbf16>
    %15 = vector.extract_strided_slice %1 {offsets = [1, 0, 0], sizes = [15, 16, 4], strides = [1, 1, 1]} : vector<16x16x4xbf16> to vector<15x16x4xbf16>
    %16 = vector.shape_cast %11 : vector<16x4xbf16> to vector<1x16x4xbf16>
    %17 = tpu.concatenate %15, %16 in 0 : vector<15x16x4xbf16>, vector<1x16x4xbf16> -> vector<16x16x4xbf16>
    %c0_13 = arith.constant 0 : index
    %c0_14 = arith.constant 0 : index
    %18 = vector.load %arg6[%c0_13, %c0_14] : memref<1x4xf32, #tpu.memory_space<vmem>>, vector<1x4xf32>
    %19 = vector.shape_cast %18 : vector<1x4xf32> to vector<4xf32>
    %20 = vector.shape_cast %19 : vector<4xf32> to vector<1x1x4xf32>
    %cst_15 = arith.constant 0.000000e+00 : f32
    %21 = vector.broadcast %cst_15 : f32 to vector<16x1x4xf32>
    %c0_16 = arith.constant 0 : index
    %c0_17 = arith.constant 0 : index
    %c0_18 = arith.constant 0 : index
    %22 = vector.load %arg5[%c0_16, %c0_17, %c0_18] : memref<16x4x4xbf16, #tpu.memory_space<vmem>>, vector<1x4x4xbf16>
    %23 = vector.shape_cast %22 : vector<1x4x4xbf16> to vector<4x4xbf16>
    %cst_19 = arith.constant dense<0.000000e+00> : vector<16x16x4xf32>
    %24 = tpu.matmul %14, %23, %cst_19 {dimension_numbers = #tpu.dot_dimension_numbers<[2], [0], [0, 1], [1], [0, 0, 0, 1, 1, 1], [], []>} : vector<16x16x4xbf16>, vector<4x4xbf16>, vector<16x16x4xf32> -> vector<16x16x4xf32>
    %c4 = arith.constant 4 : index
    %c0_20 = arith.constant 0 : index
    %c0_21 = arith.constant 0 : index
    %25 = vector.load %arg5[%c4, %c0_20, %c0_21] : memref<16x4x4xbf16, #tpu.memory_space<vmem>>, vector<1x4x4xbf16>
    %26 = vector.shape_cast %25 : vector<1x4x4xbf16> to vector<4x4xbf16>
    %cst_22 = arith.constant dense<0.000000e+00> : vector<16x16x4xf32>
    %27 = tpu.matmul %1, %26, %cst_22 {dimension_numbers = #tpu.dot_dimension_numbers<[2], [0], [0, 1], [1], [0, 0, 0, 1, 1, 1], [], []>} : vector<16x16x4xbf16>, vector<4x4xbf16>, vector<16x16x4xf32> -> vector<16x16x4xf32>
    %28 = arith.addf %24, %27 : vector<16x16x4xf32>
    %c1 = arith.constant 1 : index
    %c0_23 = arith.constant 0 : index
    %c0_24 = arith.constant 0 : index
    %29 = vector.load %arg5[%c1, %c0_23, %c0_24] : memref<16x4x4xbf16, #tpu.memory_space<vmem>>, vector<1x4x4xbf16>
    %30 = vector.shape_cast %29 : vector<1x4x4xbf16> to vector<4x4xbf16>
    %cst_25 = arith.constant dense<0.000000e+00> : vector<16x16x4xf32>
    %31 = tpu.matmul %14, %30, %cst_25 {dimension_numbers = #tpu.dot_dimension_numbers<[2], [0], [0, 1], [1], [0, 0, 0, 1, 1, 1], [], []>} : vector<16x16x4xbf16>, vector<4x4xbf16>, vector<16x16x4xf32> -> vector<16x16x4xf32>
    %c5 = arith.constant 5 : index
    %c0_26 = arith.constant 0 : index
    %c0_27 = arith.constant 0 : index
    %32 = vector.load %arg5[%c5, %c0_26, %c0_27] : memref<16x4x4xbf16, #tpu.memory_space<vmem>>, vector<1x4x4xbf16>
    %33 = vector.shape_cast %32 : vector<1x4x4xbf16> to vector<4x4xbf16>
    %cst_28 = arith.constant dense<0.000000e+00> : vector<16x16x4xf32>
    %34 = tpu.matmul %1, %33, %cst_28 {dimension_numbers = #tpu.dot_dimension_numbers<[2], [0], [0, 1], [1], [0, 0, 0, 1, 1, 1], [], []>} : vector<16x16x4xbf16>, vector<4x4xbf16>, vector<16x16x4xf32> -> vector<16x16x4xf32>
    %35 = arith.addf %31, %34 : vector<16x16x4xf32>
    %c2 = arith.constant 2 : index
    %c0_29 = arith.constant 0 : index
    %c0_30 = arith.constant 0 : index
    %36 = vector.load %arg5[%c2, %c0_29, %c0_30] : memref<16x4x4xbf16, #tpu.memory_space<vmem>>, vector<1x4x4xbf16>
    %37 = vector.shape_cast %36 : vector<1x4x4xbf16> to vector<4x4xbf16>
    %cst_31 = arith.constant dense<0.000000e+00> : vector<16x16x4xf32>
    %38 = tpu.matmul %14, %37, %cst_31 {dimension_numbers = #tpu.dot_dimension_numbers<[2], [0], [0, 1], [1], [0, 0, 0, 1, 1, 1], [], []>} : vector<16x16x4xbf16>, vector<4x4xbf16>, vector<16x16x4xf32> -> vector<16x16x4xf32>
    %c6 = arith.constant 6 : index
    %c0_32 = arith.constant 0 : index
    %c0_33 = arith.constant 0 : index
    %39 = vector.load %arg5[%c6, %c0_32, %c0_33] : memref<16x4x4xbf16, #tpu.memory_space<vmem>>, vector<1x4x4xbf16>
    %40 = vector.shape_cast %39 : vector<1x4x4xbf16> to vector<4x4xbf16>
    %cst_34 = arith.constant dense<0.000000e+00> : vector<16x16x4xf32>
    %41 = tpu.matmul %1, %40, %cst_34 {dimension_numbers = #tpu.dot_dimension_numbers<[2], [0], [0, 1], [1], [0, 0, 0, 1, 1, 1], [], []>} : vector<16x16x4xbf16>, vector<4x4xbf16>, vector<16x16x4xf32> -> vector<16x16x4xf32>
    %42 = arith.addf %38, %41 : vector<16x16x4xf32>
    %c3 = arith.constant 3 : index
    %c0_35 = arith.constant 0 : index
    %c0_36 = arith.constant 0 : index
    %43 = vector.load %arg5[%c3, %c0_35, %c0_36] : memref<16x4x4xbf16, #tpu.memory_space<vmem>>, vector<1x4x4xbf16>
    %44 = vector.shape_cast %43 : vector<1x4x4xbf16> to vector<4x4xbf16>
    %cst_37 = arith.constant dense<0.000000e+00> : vector<16x16x4xf32>
    %45 = tpu.matmul %14, %44, %cst_37 {dimension_numbers = #tpu.dot_dimension_numbers<[2], [0], [0, 1], [1], [0, 0, 0, 1, 1, 1], [], []>} : vector<16x16x4xbf16>, vector<4x4xbf16>, vector<16x16x4xf32> -> vector<16x16x4xf32>
    %c7 = arith.constant 7 : index
    %c0_38 = arith.constant 0 : index
    %c0_39 = arith.constant 0 : index
    %46 = vector.load %arg5[%c7, %c0_38, %c0_39] : memref<16x4x4xbf16, #tpu.memory_space<vmem>>, vector<1x4x4xbf16>
    %47 = vector.shape_cast %46 : vector<1x4x4xbf16> to vector<4x4xbf16>
    %cst_40 = arith.constant dense<0.000000e+00> : vector<16x16x4xf32>
    %48 = tpu.matmul %1, %47, %cst_40 {dimension_numbers = #tpu.dot_dimension_numbers<[2], [0], [0, 1], [1], [0, 0, 0, 1, 1, 1], [], []>} : vector<16x16x4xbf16>, vector<4x4xbf16>, vector<16x16x4xf32> -> vector<16x16x4xf32>
    %49 = arith.addf %45, %48 : vector<16x16x4xf32>
    %50 = vector.extract_strided_slice %28 {offsets = [0, 0, 0], sizes = [16, 15, 4], strides = [1, 1, 1]} : vector<16x16x4xf32> to vector<16x15x4xf32>
    %51 = tpu.concatenate %21, %50 in 1 : vector<16x1x4xf32>, vector<16x15x4xf32> -> vector<16x16x4xf32>
    %52 = arith.addf %35, %51 : vector<16x16x4xf32>
    %53 = vector.broadcast %20 : vector<1x1x4xf32> to vector<16x16x4xf32>
    %54 = arith.addf %52, %53 : vector<16x16x4xf32>
    %55 = vector.extract_strided_slice %49 {offsets = [0, 1, 0], sizes = [16, 15, 4], strides = [1, 1, 1]} : vector<16x16x4xf32> to vector<16x15x4xf32>
    %56 = tpu.concatenate %55, %21 in 1 : vector<16x15x4xf32>, vector<16x1x4xf32> -> vector<16x16x4xf32>
    %57 = arith.addf %42, %56 : vector<16x16x4xf32>
    %58 = vector.broadcast %20 : vector<1x1x4xf32> to vector<16x16x4xf32>
    %59 = arith.addf %57, %58 : vector<16x16x4xf32>
    %c0_41 = arith.constant 0 : index
    %c0_42 = arith.constant 0 : index
    %c0_43 = arith.constant 0 : index
    %c0_44 = arith.constant 0 : index
    %c0_45 = arith.constant 0 : index
    %60 = vector.load %arg7[%c0_41, %c0_42, %c0_43, %c0_44, %c0_45] : memref<1x16x2x16x8xf32, #tpu.memory_space<vmem>>, vector<1x16x1x16x4xf32>
    %61 = vector.shape_cast %60 : vector<1x16x1x16x4xf32> to vector<16x16x4xf32>
    %62 = vector.shape_cast %54 : vector<16x16x4xf32> to vector<1x16x1x16x4xf32>
    tpu.vector_store %arg7[%c0_41, %c0_42, %c0_43, %c0_44, %c0_45], %62 {strides = array<i32>} : memref<1x16x2x16x8xf32, #tpu.memory_space<vmem>>, vector<1x16x1x16x4xf32>,
    %c0_46 = arith.constant 0 : index
    %c0_47 = arith.constant 0 : index
    %c0_48 = arith.constant 0 : index
    %c0_49 = arith.constant 0 : index
    %c4_50 = arith.constant 4 : index
    %63 = vector.load %arg7[%c0_46, %c0_47, %c0_48, %c0_49, %c4_50] : memref<1x16x2x16x8xf32, #tpu.memory_space<vmem>>, vector<1x16x1x16x4xf32>
    %64 = vector.shape_cast %63 : vector<1x16x1x16x4xf32> to vector<16x16x4xf32>
    %65 = vector.shape_cast %59 : vector<16x16x4xf32> to vector<1x16x1x16x4xf32>
    tpu.vector_store %arg7[%c0_46, %c0_47, %c0_48, %c0_49, %c4_50], %65 {strides = array<i32>} : memref<1x16x2x16x8xf32, #tpu.memory_space<vmem>>, vector<1x16x1x16x4xf32>,
    %c8 = arith.constant 8 : index
    %c0_51 = arith.constant 0 : index
    %c0_52 = arith.constant 0 : index
    %66 = vector.load %arg5[%c8, %c0_51, %c0_52] : memref<16x4x4xbf16, #tpu.memory_space<vmem>>, vector<1x4x4xbf16>
    %67 = vector.shape_cast %66 : vector<1x4x4xbf16> to vector<4x4xbf16>
    %cst_53 = arith.constant dense<0.000000e+00> : vector<16x16x4xf32>
    %68 = tpu.matmul %1, %67, %cst_53 {dimension_numbers = #tpu.dot_dimension_numbers<[2], [0], [0, 1], [1], [0, 0, 0, 1, 1, 1], [], []>} : vector<16x16x4xbf16>, vector<4x4xbf16>, vector<16x16x4xf32> -> vector<16x16x4xf32>
    %c12 = arith.constant 12 : index
    %c0_54 = arith.constant 0 : index
    %c0_55 = arith.constant 0 : index
    %69 = vector.load %arg5[%c12, %c0_54, %c0_55] : memref<16x4x4xbf16, #tpu.memory_space<vmem>>, vector<1x4x4xbf16>
    %70 = vector.shape_cast %69 : vector<1x4x4xbf16> to vector<4x4xbf16>
    %cst_56 = arith.constant dense<0.000000e+00> : vector<16x16x4xf32>
    %71 = tpu.matmul %17, %70, %cst_56 {dimension_numbers = #tpu.dot_dimension_numbers<[2], [0], [0, 1], [1], [0, 0, 0, 1, 1, 1], [], []>} : vector<16x16x4xbf16>, vector<4x4xbf16>, vector<16x16x4xf32> -> vector<16x16x4xf32>
    %72 = arith.addf %68, %71 : vector<16x16x4xf32>
    %c9 = arith.constant 9 : index
    %c0_57 = arith.constant 0 : index
    %c0_58 = arith.constant 0 : index
    %73 = vector.load %arg5[%c9, %c0_57, %c0_58] : memref<16x4x4xbf16, #tpu.memory_space<vmem>>, vector<1x4x4xbf16>
    %74 = vector.shape_cast %73 : vector<1x4x4xbf16> to vector<4x4xbf16>
    %cst_59 = arith.constant dense<0.000000e+00> : vector<16x16x4xf32>
    %75 = tpu.matmul %1, %74, %cst_59 {dimension_numbers = #tpu.dot_dimension_numbers<[2], [0], [0, 1], [1], [0, 0, 0, 1, 1, 1], [], []>} : vector<16x16x4xbf16>, vector<4x4xbf16>, vector<16x16x4xf32> -> vector<16x16x4xf32>
    %c13 = arith.constant 13 : index
    %c0_60 = arith.constant 0 : index
    %c0_61 = arith.constant 0 : index
    %76 = vector.load %arg5[%c13, %c0_60, %c0_61] : memref<16x4x4xbf16, #tpu.memory_space<vmem>>, vector<1x4x4xbf16>
    %77 = vector.shape_cast %76 : vector<1x4x4xbf16> to vector<4x4xbf16>
    %cst_62 = arith.constant dense<0.000000e+00> : vector<16x16x4xf32>
    %78 = tpu.matmul %17, %77, %cst_62 {dimension_numbers = #tpu.dot_dimension_numbers<[2], [0], [0, 1], [1], [0, 0, 0, 1, 1, 1], [], []>} : vector<16x16x4xbf16>, vector<4x4xbf16>, vector<16x16x4xf32> -> vector<16x16x4xf32>
    %79 = arith.addf %75, %78 : vector<16x16x4xf32>
    %c10 = arith.constant 10 : index
    %c0_63 = arith.constant 0 : index
    %c0_64 = arith.constant 0 : index
    %80 = vector.load %arg5[%c10, %c0_63, %c0_64] : memref<16x4x4xbf16, #tpu.memory_space<vmem>>, vector<1x4x4xbf16>
    %81 = vector.shape_cast %80 : vector<1x4x4xbf16> to vector<4x4xbf16>
    %cst_65 = arith.constant dense<0.000000e+00> : vector<16x16x4xf32>
    %82 = tpu.matmul %1, %81, %cst_65 {dimension_numbers = #tpu.dot_dimension_numbers<[2], [0], [0, 1], [1], [0, 0, 0, 1, 1, 1], [], []>} : vector<16x16x4xbf16>, vector<4x4xbf16>, vector<16x16x4xf32> -> vector<16x16x4xf32>
    %c14 = arith.constant 14 : index
    %c0_66 = arith.constant 0 : index
    %c0_67 = arith.constant 0 : index
    %83 = vector.load %arg5[%c14, %c0_66, %c0_67] : memref<16x4x4xbf16, #tpu.memory_space<vmem>>, vector<1x4x4xbf16>
    %84 = vector.shape_cast %83 : vector<1x4x4xbf16> to vector<4x4xbf16>
    %cst_68 = arith.constant dense<0.000000e+00> : vector<16x16x4xf32>
    %85 = tpu.matmul %17, %84, %cst_68 {dimension_numbers = #tpu.dot_dimension_numbers<[2], [0], [0, 1], [1], [0, 0, 0, 1, 1, 1], [], []>} : vector<16x16x4xbf16>, vector<4x4xbf16>, vector<16x16x4xf32> -> vector<16x16x4xf32>
    %86 = arith.addf %82, %85 : vector<16x16x4xf32>
    %c11 = arith.constant 11 : index
    %c0_69 = arith.constant 0 : index
    %c0_70 = arith.constant 0 : index
    %87 = vector.load %arg5[%c11, %c0_69, %c0_70] : memref<16x4x4xbf16, #tpu.memory_space<vmem>>, vector<1x4x4xbf16>
    %88 = vector.shape_cast %87 : vector<1x4x4xbf16> to vector<4x4xbf16>
    %cst_71 = arith.constant dense<0.000000e+00> : vector<16x16x4xf32>
    %89 = tpu.matmul %1, %88, %cst_71 {dimension_numbers = #tpu.dot_dimension_numbers<[2], [0], [0, 1], [1], [0, 0, 0, 1, 1, 1], [], []>} : vector<16x16x4xbf16>, vector<4x4xbf16>, vector<16x16x4xf32> -> vector<16x16x4xf32>
    %c15 = arith.constant 15 : index
    %c0_72 = arith.constant 0 : index
    %c0_73 = arith.constant 0 : index
    %90 = vector.load %arg5[%c15, %c0_72, %c0_73] : memref<16x4x4xbf16, #tpu.memory_space<vmem>>, vector<1x4x4xbf16>
    %91 = vector.shape_cast %90 : vector<1x4x4xbf16> to vector<4x4xbf16>
    %cst_74 = arith.constant dense<0.000000e+00> : vector<16x16x4xf32>
    %92 = tpu.matmul %17, %91, %cst_74 {dimension_numbers = #tpu.dot_dimension_numbers<[2], [0], [0, 1], [1], [0, 0, 0, 1, 1, 1], [], []>} : vector<16x16x4xbf16>, vector<4x4xbf16>, vector<16x16x4xf32> -> vector<16x16x4xf32>
    %93 = arith.addf %89, %92 : vector<16x16x4xf32>
    %94 = vector.extract_strided_slice %72 {offsets = [0, 0, 0], sizes = [16, 15, 4], strides = [1, 1, 1]} : vector<16x16x4xf32> to vector<16x15x4xf32>
    %95 = tpu.concatenate %21, %94 in 1 : vector<16x1x4xf32>, vector<16x15x4xf32> -> vector<16x16x4xf32>
    %96 = arith.addf %79, %95 : vector<16x16x4xf32>
    %97 = vector.broadcast %20 : vector<1x1x4xf32> to vector<16x16x4xf32>
    %98 = arith.addf %96, %97 : vector<16x16x4xf32>
    %99 = vector.extract_strided_slice %93 {offsets = [0, 1, 0], sizes = [16, 15, 4], strides = [1, 1, 1]} : vector<16x16x4xf32> to vector<16x15x4xf32>
    %100 = tpu.concatenate %99, %21 in 1 : vector<16x15x4xf32>, vector<16x1x4xf32> -> vector<16x16x4xf32>
    %101 = arith.addf %86, %100 : vector<16x16x4xf32>
    %102 = vector.broadcast %20 : vector<1x1x4xf32> to vector<16x16x4xf32>
    %103 = arith.addf %101, %102 : vector<16x16x4xf32>
    %c0_75 = arith.constant 0 : index
    %c0_76 = arith.constant 0 : index
    %c1_77 = arith.constant 1 : index
    %c0_78 = arith.constant 0 : index
    %c0_79 = arith.constant 0 : index
    %104 = vector.load %arg7[%c0_75, %c0_76, %c1_77, %c0_78, %c0_79] : memref<1x16x2x16x8xf32, #tpu.memory_space<vmem>>, vector<1x16x1x16x4xf32>
    %105 = vector.shape_cast %104 : vector<1x16x1x16x4xf32> to vector<16x16x4xf32>
    %106 = vector.shape_cast %98 : vector<16x16x4xf32> to vector<1x16x1x16x4xf32>
    tpu.vector_store %arg7[%c0_75, %c0_76, %c1_77, %c0_78, %c0_79], %106 {strides = array<i32>} : memref<1x16x2x16x8xf32, #tpu.memory_space<vmem>>, vector<1x16x1x16x4xf32>,
    %c0_80 = arith.constant 0 : index
    %c0_81 = arith.constant 0 : index
    %c1_82 = arith.constant 1 : index
    %c0_83 = arith.constant 0 : index
    %c4_84 = arith.constant 4 : index
    %107 = vector.load %arg7[%c0_80, %c0_81, %c1_82, %c0_83, %c4_84] : memref<1x16x2x16x8xf32, #tpu.memory_space<vmem>>, vector<1x16x1x16x4xf32>
    %108 = vector.shape_cast %107 : vector<1x16x1x16x4xf32> to vector<16x16x4xf32>
    %109 = vector.shape_cast %103 : vector<16x16x4xf32> to vector<1x16x1x16x4xf32>
    tpu.vector_store %arg7[%c0_80, %c0_81, %c1_82, %c0_83, %c4_84], %109 {strides = array<i32>} : memref<1x16x2x16x8xf32, #tpu.memory_space<vmem>>, vector<1x16x1x16x4xf32>,
    return
  }
  func.func @transform_0(%arg0: i32, %arg1: i32) -> (i32, i32, i32, i32) {
    %c0_i32 = arith.constant 0 : i32
    %c0_i32_0 = arith.constant 0 : i32
    %c0_i32_1 = arith.constant 0 : i32
    return %arg0, %arg1, %c0_i32, %c0_i32_0 : i32, i32, i32, i32
  }
  func.func @transform_1(%arg0: i32, %arg1: i32) -> (i32, i32, i32, i32) {
    %c16_i32 = arith.constant 16 : i32
    %0 = arith.muli %arg1, %c16_i32 : i32
    %c1_i32 = arith.constant 1 : i32
    %1 = arith.subi %0, %c1_i32 : i32
    %c0_i32 = arith.constant 0 : i32
    %2 = arith.maxsi %1, %c0_i32 : i32
    %c0_i32_0 = arith.constant 0 : i32
    %c0_i32_1 = arith.constant 0 : i32
    %c0_i32_2 = arith.constant 0 : i32
    return %arg0, %2, %c0_i32_0, %c0_i32_1 : i32, i32, i32, i32
  }
  func.func @transform_2(%arg0: i32, %arg1: i32) -> (i32, i32, i32, i32) {
    %c1_i32 = arith.constant 1 : i32
    %0 = arith.addi %arg1, %c1_i32 : i32
    %c16_i32 = arith.constant 16 : i32
    %1 = arith.muli %0, %c16_i32 : i32
    %c15_i32 = arith.constant 15 : i32
    %2 = arith.minsi %1, %c15_i32 : i32
    %c0_i32 = arith.constant 0 : i32
    %c0_i32_0 = arith.constant 0 : i32
    %c0_i32_1 = arith.constant 0 : i32
    return %arg0, %2, %c0_i32, %c0_i32_0 : i32, i32, i32, i32
  }
  func.func @transform_3(%arg0: i32, %arg1: i32) -> (i32, i32, i32) {
    %c0_i32 = arith.constant 0 : i32
    %c0_i32_0 = arith.constant 0 : i32
    %c0_i32_1 = arith.constant 0 : i32
    %c0_i32_2 = arith.constant 0 : i32
    return %c0_i32, %c0_i32_0, %c0_i32_1 : i32, i32, i32
  }
  func.func @transform_4(%arg0: i32, %arg1: i32) -> (i32, i32) {
    %c0_i32 = arith.constant 0 : i32
    %c0_i32_0 = arith.constant 0 : i32
    %c0_i32_1 = arith.constant 0 : i32
    return %c0_i32, %c0_i32_0 : i32, i32
  }
  func.func @transform_5(%arg0: i32, %arg1: i32) -> (i32, i32, i32, i32, i32) {
    %c0_i32 = arith.constant 0 : i32
    %c0_i32_0 = arith.constant 0 : i32
    %c0_i32_1 = arith.constant 0 : i32
    %c0_i32_2 = arith.constant 0 : i32
    return %arg0, %arg1, %c0_i32, %c0_i32_0, %c0_i32_1 : i32, i32, i32, i32, i32
  }
}

</mosaic_0001>

<bundles_post_ra>
// kernel: upsamples_forward.1
= control target key start
LH: loop header
LB: loop body
LE: loop exit
PB: predicated region body
PF: predicated region fallthrough
CT: control target
= control target key end

     0   :  { %s6122_s18 = smov 0   ;;  %s6124_s19 = smov 0   ;;  %s7412_s0 = inlined_call_operand.vmem [shape: bf16[2,16,16,4], index: 0, kind: input, shape index: {}, may-alias: {0,1,2}]   ;;  %s7413_s1 = inlined_call_operand.vmem [shape: bf16[2,16,16,4], index: 1, kind: input, shape index: {}, may-alias: {0,1,2}]   ;;  %s7414_s2 = inlined_call_operand.vmem [shape: bf16[2,16,16,4], index: 2, kind: input, shape index: {}, may-alias: {0,1,2}]   ;;  %s7415_s3 = inlined_call_operand.vmem [shape: bf16[16,4,4], index: 3, kind: input, shape index: {}]   ;;  %s7416_s4 = inlined_call_operand.vmem [shape: f32[1,4], index: 4, kind: input, shape index: {}]   ;;  %s7417_s5 = inlined_call_operand.vmem [shape: f32[2,16,2,16,8], index: 5, kind: output, shape index: {}]  }
   0x1   :  { %s6126_s20 = smov 0  }
   0x2 LB: > { %s27_s1 = sadd.s32 1, %s6084_s19  ;;  %p4548_p0 = scmp.ge.s32.totalorder %s6088_s20, 1  ;;  %s6088_s20 = sphi %s6126_s20, %s15_s20   ;;  %s6084_s19 = sphi %s6124_s19, %s7419_s19   ;;  %s6080_s18 = sphi %s6122_s18, %s7418_s18  }
   0x3   : > { %p29_p1 = scmp.ge.s32.totalorder %s27_s1, 2  ;;  %p273_p2 = scmp.lt.s32.totalorder %s6088_s20, 3 }
   0x5   : > { %s7421_s1 = smov (%p29_p1, %s27_s1), 0  ;;  %p274_p3 = pnand %p4548_p0, %p273_p2 }
   0x6   : > { %vm575_vm0 = vcmask (!%p274_p3), 1041408   ;;  %v4608_v0 = vld [vmem:[%s7415_s3 + $0xa] sm:$0x3] (!%p274_p3)  ;;  %v4557_v1 = vld [vmem:[%s7415_s3 + $0x8] sm:$0x3] (!%p274_p3)  ;;  %p338_p4 = scmp.lt.s32.totalorder (!%p274_p3), %s6080_s18, 1 }
   0x7   : > { %277 = sbr.rel (%p274_p3) target bundleno = 865 (0x361), region = 40  ;;  %5992 = vmatprep.subr.msk.bf16.mxu1 (!%p274_p3), %vm575_vm0, %v4608_v0  ;;  %5990 = vmatprep.subr.msk.bf16.mxu0 (!%p274_p3), %vm575_vm0, %v4557_v1  ;;  %v917_v2 = vsel (!%p274_p3), %vm575_vm0, %v4608_v0, 0  ;;  %v577_v3 = vsel (!%p274_p3), %vm575_vm0, %v4557_v1, 0  ;;  %v4607_v4 = vld [vmem:[%s7415_s3 + $0x2] sm:$0x3] (!%p274_p3)  ;;  %vm526_vm1 = vcmask (!%p274_p3), 31744  }
   0x8   : > { %5259 = vmatpush3.bf16.msra.mxu1 (!%p274_p3), %v917_v2  ;;  %5191 = vmatpush3.bf16.msra.mxu0 (!%p274_p3), %v577_v3  ;;  %v443_v5 = vld [vmem:[%s7415_s3] sm:$0x3] (!%p274_p3)  ;;  %v1081_v7 = vsel (!%p274_p3), %vm575_vm0, %v4607_v4, 0  ;;  %v4676_v10 = vld [vmem:[%s7415_s3 + $0xe] sm:$0x3] (!%p274_p3)  ;;  %v6090_v26 = vmov (!%p274_p3), 0  }
   0x9   : > { %5993 = vmatprep.subr.msk.bf16.mxu1 (!%p274_p3), %vm575_vm0, %v4607_v4  ;;  %5991 = vmatprep.subr.msk.bf16.mxu0 (!%p274_p3), %vm575_vm0, %v443_v5  ;;  %v749_v9 = vsel (!%p274_p3), %vm575_vm0, %v443_v5, 0  ;;  %v4642_v12 = vld [vmem:[%s7415_s3 + $0xc] sm:$0x3] (!%p274_p3)  ;;  %v6284_v27 = vcombine.low (!%p274_p3), %v6090_v26, %v6090_v26  ;;  %v1581_v28 = vsel (!%p274_p3), %vm575_vm0, %v4676_v10, 0  ;;  %v4675_v30 = vld [vmem:[%s7415_s3 + $0x6] sm:$0x3] (!%p274_p3) }
   0xa   : > { %v1249_v29 = vsel (!%p274_p3), %vm575_vm0, %v4642_v12, 0  ;;  %v4641_v31 = vld [vmem:[%s7415_s3 + $0x4] sm:$0x3] (!%p274_p3)  ;;  %v1745_v32 = vsel (!%p274_p3), %vm575_vm0, %v4675_v30, 0  ;;  %v4746_v34 = vld [vmem:[%s7415_s3 + $0x1a] sm:$0x3] (!%p274_p3) }
   0xb   : > { %v1413_v33 = vsel (!%p274_p3), %vm575_vm0, %v4641_v31, 0  ;;  %v4711_v35 = vld [vmem:[%s7415_s3 + $0x18] sm:$0x3] (!%p274_p3)  ;;  %v2838_v36 = vsel (!%p274_p3), %vm575_vm0, %v4746_v34, 0  ;;  %v4745_v38 = vld [vmem:[%s7415_s3 + $0x12] sm:$0x3] (!%p274_p3) }
   0xc   : > { %v2506_v37 = vsel (!%p274_p3), %vm575_vm0, %v4711_v35, 0  ;;  %v4710_v39 = vld [vmem:[%s7415_s3 + $0x10] sm:$0x3] (!%p274_p3)  ;;  %v3002_v40 = vsel (!%p274_p3), %vm575_vm0, %v4745_v38, 0  ;;  %v6525_v42 = vld [vmem:[%s7415_s3 + $0x1e] sm:$0x3] (!%p274_p3) }
   0xd   : > { %v2670_v41 = vsel (!%p274_p3), %vm575_vm0, %v4710_v39, 0  ;;  %v6530_v43 = vld [vmem:[%s7415_s3 + $0x1c] sm:$0x3] (!%p274_p3)  ;;  %vm1940_vm2 = vcmask (!%p274_p3), 1040384   ;;  %v6560_v52 = vld [vmem:[%s7416_s4] ss:$0 sm:$0xff] (!%p274_p3) }
   0xe   : > { %s7423_s18 = smov (!%p338_p4, %s6080_s18), 1  ;;  %vm2139_vm3 = vcmask 1046528   ;;  %s6091_s14 = smov 4   ;;  %vm2460_vm4 = vcmask 64544  }
   0xf   : > { %s4913_s28 = sshll.u32 %s7423_s18, 7  ;;  %s4917_s29 = sshll.u32 %s7423_s18, 9 }
  0x10   : > { %s6164_s6 = scalar_lea.vmem %s7412_s0, %s4913_s28  ;;  %s6567_s18 = scalar_lea.vmem %s7417_s5, %s4917_s29 }
  0x11   : > { %v6167_v6 = vld [vmem:[%s6164_s6] sm:$0xff]   ;;  %v6171_v8 = vld [vmem:[%s6164_s6 + $0x8] sm:$0xff]   ;;  %v6182_v11 = vld [vmem:[%s6164_s6 + $0x10] sm:$0xff]  }
  0x12   : > { %5192 = vmatprep.mubr.msk.bf16.mxu0 %vm526_vm1, %v6167_v6  ;;  %5260 = vmatprep.mubr.msk.bf16.mxu1 %vm526_vm1, %v6167_v6  ;;  %v6198_v13 = vld [vmem:[%s6164_s6 + $0x18] sm:$0xff]   ;;  %v6201_v14 = vld [vmem:[%s6164_s6 + $0x20] sm:$0xff]   ;;  %v6212_v15 = vld [vmem:[%s6164_s6 + $0x28] sm:$0xff]  }
  0x13   : > { %5193 = vmatmul.mubr.msk.bf16.vlgmr.msra.gmra.mrb[0].mxu0 %vm526_vm1, %v6171_v8  ;;  %5261 = vmatmul.mubr.msk.bf16.vlgmr.msra.gmra.mrb[0].mxu1 %vm526_vm1, %v6171_v8  ;;  %v6215_v16 = vld [vmem:[%s6164_s6 + $0x30] sm:$0xff]   ;;  %v6226_v17 = vld [vmem:[%s6164_s6 + $0x38] sm:$0xff]   ;;  %v6229_v18 = vld [vmem:[%s6164_s6 + $0x40] sm:$0xff]  }
  0x14   : > { %5293 = vmatpush3.bf16.msra.mxu1 %v1081_v7  ;;  %5225 = vmatpush3.bf16.msra.mxu0 %v749_v9  ;;  %v6240_v19 = vld [vmem:[%s6164_s6 + $0x48] sm:$0xff]   ;;  %v6243_v20 = vld [vmem:[%s6164_s6 + $0x50] sm:$0xff]   ;;  %v6254_v21 = vld [vmem:[%s6164_s6 + $0x58] sm:$0xff]  }
  0x15   : > { %5196 = vmatprep.mubr.msk.bf16.mxu0 %vm526_vm1, %v6182_v11  ;;  %5264 = vmatprep.mubr.msk.bf16.mxu1 %vm526_vm1, %v6182_v11  ;;  %v6257_v22 = vld [vmem:[%s6164_s6 + $0x60] sm:$0xff]   ;;  %v6268_v23 = vld [vmem:[%s6164_s6 + $0x68] sm:$0xff]   ;;  %v6271_v24 = vld [vmem:[%s6164_s6 + $0x70] sm:$0xff]  }
  0x16   : > { %5996 = vmatprep.subr.msk.bf16.mxu1 %vm575_vm0, %v4676_v10  ;;  %5994 = vmatprep.subr.msk.bf16.mxu0 %vm575_vm0, %v4642_v12  ;;  %v6282_v25 = vld [vmem:[%s6164_s6 + $0x78] sm:$0xff]  }
  0x1b   : > { %5197 = vmatmul.mubr.msk.bf16.gmra.mrb[4].mxu0 %vm526_vm1, %v6198_v13  ;;  %5265 = vmatmul.mubr.msk.bf16.gmra.mrb[4].mxu1 %vm526_vm1, %v6198_v13 }
  0x1c   : > { %5200 = vmatprep.mubr.msk.bf16.mxu0 %vm526_vm1, %v6201_v14  ;;  %5268 = vmatprep.mubr.msk.bf16.mxu1 %vm526_vm1, %v6201_v14 }
  0x23   : > { %5201 = vmatmul.mubr.msk.bf16.gmra.mrb[8].mxu0 %vm526_vm1, %v6212_v15  ;;  %5269 = vmatmul.mubr.msk.bf16.gmra.mrb[8].mxu1 %vm526_vm1, %v6212_v15 }
  0x24   : > { %5204 = vmatprep.mubr.msk.bf16.mxu0 %vm526_vm1, %v6215_v16  ;;  %5272 = vmatprep.mubr.msk.bf16.mxu1 %vm526_vm1, %v6215_v16 }
  0x2b   : > { %5205 = vmatmul.mubr.msk.bf16.gmra.mrb[12].mxu0 %vm526_vm1, %v6226_v17  ;;  %5273 = vmatmul.mubr.msk.bf16.gmra.mrb[12].mxu1 %vm526_vm1, %v6226_v17 }
  0x2c   : > { %5208 = vmatprep.mubr.msk.bf16.mxu0 %vm526_vm1, %v6229_v18  ;;  %5276 = vmatprep.mubr.msk.bf16.mxu1 %vm526_vm1, %v6229_v18 }
  0x33   : > { %5209 = vmatmul.mubr.msk.bf16.gmra.mrb[16].mxu0 %vm526_vm1, %v6240_v19  ;;  %5277 = vmatmul.mubr.msk.bf16.gmra.mrb[16].mxu1 %vm526_vm1, %v6240_v19 }
  0x34   : > { %5212 = vmatprep.mubr.msk.bf16.mxu0 %vm526_vm1, %v6243_v20  ;;  %5280 = vmatprep.mubr.msk.bf16.mxu1 %vm526_vm1, %v6243_v20 }
  0x3b   : > { %5213 = vmatmul.mubr.msk.bf16.gmra.mrb[20].mxu0 %vm526_vm1, %v6254_v21  ;;  %5281 = vmatmul.mubr.msk.bf16.gmra.mrb[20].mxu1 %vm526_vm1, %v6254_v21 }
  0x3c   : > { %5216 = vmatprep.mubr.msk.bf16.mxu0 %vm526_vm1, %v6257_v22  ;;  %5284 = vmatprep.mubr.msk.bf16.mxu1 %vm526_vm1, %v6257_v22 }
  0x43   : > { %5217 = vmatmul.mubr.msk.bf16.gmra.mrb[24].mxu0 %vm526_vm1, %v6268_v23  ;;  %5285 = vmatmul.mubr.msk.bf16.gmra.mrb[24].mxu1 %vm526_vm1, %v6268_v23 }
  0x44   : > { %5220 = vmatprep.mubr.msk.bf16.mxu0 %vm526_vm1, %v6271_v24  ;;  %5288 = vmatprep.mubr.msk.bf16.mxu1 %vm526_vm1, %v6271_v24 }
  0x4b   : > { %5221 = vmatmul.mubr.msk.bf16.gmra.mrb[28].mxu0 %vm526_vm1, %v6282_v25  ;;  %5289 = vmatmul.mubr.msk.bf16.gmra.mrb[28].mxu1 %vm526_vm1, %v6282_v25 }
  0x4c   : > { %5226 = vmatprep.mubr.msk.bf16.mxu0 %vm526_vm1, %v6284_v27  ;;  %5294 = vmatprep.mubr.msk.bf16.mxu1 %vm526_vm1, %v6284_v27 }
  0x53   : > { %5227 = vmatmul.mubr.msk.bf16.vlgmr.msra.gmra.mrb[0].mxu0 %vm526_vm1, %v6167_v6  ;;  %5295 = vmatmul.mubr.msk.bf16.vlgmr.msra.gmra.mrb[0].mxu1 %vm526_vm1, %v6167_v6 }
  0x54   : > { %5395 = vmatpush3.bf16.msra.mxu1 %v1581_v28  ;;  %5327 = vmatpush3.bf16.msra.mxu0 %v1249_v29 }
  0x55   : > { %5230 = vmatprep.mubr.msk.bf16.mxu0 %vm526_vm1, %v6171_v8  ;;  %5298 = vmatprep.mubr.msk.bf16.mxu1 %vm526_vm1, %v6171_v8 }
  0x56   : > { %5997 = vmatprep.subr.msk.bf16.mxu1 %vm575_vm0, %v4675_v30  ;;  %5995 = vmatprep.subr.msk.bf16.mxu0 %vm575_vm0, %v4641_v31 }
  0x5b   : > { %5231 = vmatmul.mubr.msk.bf16.gmra.mrb[4].mxu0 %vm526_vm1, %v6182_v11  ;;  %5299 = vmatmul.mubr.msk.bf16.gmra.mrb[4].mxu1 %vm526_vm1, %v6182_v11 }
  0x5c   : > { %5234 = vmatprep.mubr.msk.bf16.mxu0 %vm526_vm1, %v6198_v13  ;;  %5302 = vmatprep.mubr.msk.bf16.mxu1 %vm526_vm1, %v6198_v13 }
  0x63   : > { %5235 = vmatmul.mubr.msk.bf16.gmra.mrb[8].mxu0 %vm526_vm1, %v6201_v14  ;;  %5303 = vmatmul.mubr.msk.bf16.gmra.mrb[8].mxu1 %vm526_vm1, %v6201_v14 }
  0x64   : > { %5238 = vmatprep.mubr.msk.bf16.mxu0 %vm526_vm1, %v6212_v15  ;;  %5306 = vmatprep.mubr.msk.bf16.mxu1 %vm526_vm1, %v6212_v15 }
  0x6b   : > { %5239 = vmatmul.mubr.msk.bf16.gmra.mrb[12].mxu0 %vm526_vm1, %v6215_v16  ;;  %5307 = vmatmul.mubr.msk.bf16.gmra.mrb[12].mxu1 %vm526_vm1, %v6215_v16 }
  0x6c   : > { %5242 = vmatprep.mubr.msk.bf16.mxu0 %vm526_vm1, %v6226_v17  ;;  %5310 = vmatprep.mubr.msk.bf16.mxu1 %vm526_vm1, %v6226_v17 }
  0x73   : > { %5243 = vmatmul.mubr.msk.bf16.gmra.mrb[16].mxu0 %vm526_vm1, %v6229_v18  ;;  %5311 = vmatmul.mubr.msk.bf16.gmra.mrb[16].mxu1 %vm526_vm1, %v6229_v18 }
  0x74   : > { %5246 = vmatprep.mubr.msk.bf16.mxu0 %vm526_vm1, %v6240_v19  ;;  %5314 = vmatprep.mubr.msk.bf16.mxu1 %vm526_vm1, %v6240_v19 }
  0x7b   : > { %5247 = vmatmul.mubr.msk.bf16.gmra.mrb[20].mxu0 %vm526_vm1, %v6243_v20  ;;  %5315 = vmatmul.mubr.msk.bf16.gmra.mrb[20].mxu1 %vm526_vm1, %v6243_v20 }
  0x7c   : > { %5250 = vmatprep.mubr.msk.bf16.mxu0 %vm526_vm1, %v6254_v21  ;;  %5318 = vmatprep.mubr.msk.bf16.mxu1 %vm526_vm1, %v6254_v21 }
  0x83   : > { %5251 = vmatmul.mubr.msk.bf16.gmra.mrb[24].mxu0 %vm526_vm1, %v6257_v22  ;;  %5319 = vmatmul.mubr.msk.bf16.gmra.mrb[24].mxu1 %vm526_vm1, %v6257_v22 }
  0x84   : > { %5254 = vmatprep.mubr.msk.bf16.mxu0 %vm526_vm1, %v6268_v23  ;;  %5322 = vmatprep.mubr.msk.bf16.mxu1 %vm526_vm1, %v6268_v23 }
  0x8b   : > { %5255 = vmatmul.mubr.msk.bf16.gmra.mrb[28].mxu0 %vm526_vm1, %v6271_v24  ;;  %5323 = vmatmul.mubr.msk.bf16.gmra.mrb[28].mxu1 %vm526_vm1, %v6271_v24 }
  0x8c   : > { %5328 = vmatprep.mubr.msk.bf16.mxu0 %vm526_vm1, %v6167_v6  ;;  %5396 = vmatprep.mubr.msk.bf16.mxu1 %vm526_vm1, %v6167_v6 }
  0x93   : > { %5329 = vmatmul.mubr.msk.bf16.vlgmr.msra.gmra.mrb[32].mxu0 %vm526_vm1, %v6171_v8  ;;  %5397 = vmatmul.mubr.msk.bf16.vlgmr.msra.gmra.mrb[32].mxu1 %vm526_vm1, %v6171_v8 }
  0x94   : > { %5429 = vmatpush3.bf16.msra.mxu1 %v1745_v32  ;;  %5361 = vmatpush3.bf16.msra.mxu0 %v1413_v33 }
  0x95   : > { %5332 = vmatprep.mubr.msk.bf16.mxu0 %vm526_vm1, %v6182_v11  ;;  %5400 = vmatprep.mubr.msk.bf16.mxu1 %vm526_vm1, %v6182_v11 }
  0x96   : > { %6000 = vmatprep.subr.msk.bf16.mxu1 %vm575_vm0, %v4746_v34  ;;  %5998 = vmatprep.subr.msk.bf16.mxu0 %vm575_vm0, %v4711_v35 }
  0x9b   : > { %5333 = vmatmul.mubr.msk.bf16.gmra.mrb[36].mxu0 %vm526_vm1, %v6198_v13  ;;  %5401 = vmatmul.mubr.msk.bf16.gmra.mrb[36].mxu1 %vm526_vm1, %v6198_v13 }
  0x9c   : > { %5336 = vmatprep.mubr.msk.bf16.mxu0 %vm526_vm1, %v6201_v14  ;;  %5404 = vmatprep.mubr.msk.bf16.mxu1 %vm526_vm1, %v6201_v14 }
  0xa3   : > { %5337 = vmatmul.mubr.msk.bf16.gmra.mrb[40].mxu0 %vm526_vm1, %v6212_v15  ;;  %5405 = vmatmul.mubr.msk.bf16.gmra.mrb[40].mxu1 %vm526_vm1, %v6212_v15 }
  0xa4   : > { %5340 = vmatprep.mubr.msk.bf16.mxu0 %vm526_vm1, %v6215_v16  ;;  %5408 = vmatprep.mubr.msk.bf16.mxu1 %vm526_vm1, %v6215_v16 }
  0xab   : > { %5341 = vmatmul.mubr.msk.bf16.gmra.mrb[44].mxu0 %vm526_vm1, %v6226_v17  ;;  %5409 = vmatmul.mubr.msk.bf16.gmra.mrb[44].mxu1 %vm526_vm1, %v6226_v17 }
  0xac   : > { %5344 = vmatprep.mubr.msk.bf16.mxu0 %vm526_vm1, %v6229_v18  ;;  %5412 = vmatprep.mubr.msk.bf16.mxu1 %vm526_vm1, %v6229_v18 }
  0xb3   : > { %5345 = vmatmul.mubr.msk.bf16.gmra.mrb[48].mxu0 %vm526_vm1, %v6240_v19  ;;  %5413 = vmatmul.mubr.msk.bf16.gmra.mrb[48].mxu1 %vm526_vm1, %v6240_v19 }
  0xb4   : > { %5348 = vmatprep.mubr.msk.bf16.mxu0 %vm526_vm1, %v6243_v20  ;;  %5416 = vmatprep.mubr.msk.bf16.mxu1 %vm526_vm1, %v6243_v20 }
  0xbb   : > { %5349 = vmatmul.mubr.msk.bf16.gmra.mrb[52].mxu0 %vm526_vm1, %v6254_v21  ;;  %5417 = vmatmul.mubr.msk.bf16.gmra.mrb[52].mxu1 %vm526_vm1, %v6254_v21 }
  0xbc   : > { %5352 = vmatprep.mubr.msk.bf16.mxu0 %vm526_vm1, %v6257_v22  ;;  %5420 = vmatprep.mubr.msk.bf16.mxu1 %vm526_vm1, %v6257_v22 }
  0xc3   : > { %5353 = vmatmul.mubr.msk.bf16.gmra.mrb[56].mxu0 %vm526_vm1, %v6268_v23  ;;  %5421 = vmatmul.mubr.msk.bf16.gmra.mrb[56].mxu1 %vm526_vm1, %v6268_v23 }
  0xc4   : > { %5356 = vmatprep.mubr.msk.bf16.mxu0 %vm526_vm1, %v6271_v24  ;;  %5424 = vmatprep.mubr.msk.bf16.mxu1 %vm526_vm1, %v6271_v24 }
  0xcb   : > { %5357 = vmatmul.mubr.msk.bf16.gmra.mrb[60].mxu0 %vm526_vm1, %v6282_v25  ;;  %5425 = vmatmul.mubr.msk.bf16.gmra.mrb[60].mxu1 %vm526_vm1, %v6282_v25 }
  0xcc   : > { %5362 = vmatprep.mubr.msk.bf16.mxu0 %vm526_vm1, %v6284_v27  ;;  %5430 = vmatprep.mubr.msk.bf16.mxu1 %vm526_vm1, %v6284_v27 }
  0xd3   : > { %5363 = vmatmul.mubr.msk.bf16.vlgmr.msra.gmra.mrb[32].mxu0 %vm526_vm1, %v6167_v6  ;;  %5431 = vmatmul.mubr.msk.bf16.vlgmr.msra.gmra.mrb[32].mxu1 %vm526_vm1, %v6167_v6 }
  0xd4   : > { %5531 = vmatpush3.bf16.msra.mxu1 %v2838_v36  ;;  %5463 = vmatpush3.bf16.msra.mxu0 %v2506_v37 }
  0xd5   : > { %5366 = vmatprep.mubr.msk.bf16.mxu0 %vm526_vm1, %v6171_v8  ;;  %5434 = vmatprep.mubr.msk.bf16.mxu1 %vm526_vm1, %v6171_v8 }
  0xd6   : > { %6001 = vmatprep.subr.msk.bf16.mxu1 %vm575_vm0, %v4745_v38  ;;  %5999 = vmatprep.subr.msk.bf16.mxu0 %vm575_vm0, %v4710_v39 }
  0xdb   : > { %5367 = vmatmul.mubr.msk.bf16.gmra.mrb[36].mxu0 %vm526_vm1, %v6182_v11  ;;  %5435 = vmatmul.mubr.msk.bf16.gmra.mrb[36].mxu1 %vm526_vm1, %v6182_v11 }
  0xdc   : > { %5370 = vmatprep.mubr.msk.bf16.mxu0 %vm526_vm1, %v6198_v13  ;;  %5438 = vmatprep.mubr.msk.bf16.mxu1 %vm526_vm1, %v6198_v13 }
  0xe3   : > { %5371 = vmatmul.mubr.msk.bf16.gmra.mrb[40].mxu0 %vm526_vm1, %v6201_v14  ;;  %5439 = vmatmul.mubr.msk.bf16.gmra.mrb[40].mxu1 %vm526_vm1, %v6201_v14 }
  0xe4   : > { %5374 = vmatprep.mubr.msk.bf16.mxu0 %vm526_vm1, %v6212_v15  ;;  %5442 = vmatprep.mubr.msk.bf16.mxu1 %vm526_vm1, %v6212_v15 }
  0xeb   : > { %5375 = vmatmul.mubr.msk.bf16.gmra.mrb[44].mxu0 %vm526_vm1, %v6215_v16  ;;  %5443 = vmatmul.mubr.msk.bf16.gmra.mrb[44].mxu1 %vm526_vm1, %v6215_v16 }
  0xec   : > { %5378 = vmatprep.mubr.msk.bf16.mxu0 %vm526_vm1, %v6226_v17  ;;  %5446 = vmatprep.mubr.msk.bf16.mxu1 %vm526_vm1, %v6226_v17 }
  0xf3   : > { %5379 = vmatmul.mubr.msk.bf16.gmra.mrb[48].mxu0 %vm526_vm1, %v6229_v18  ;;  %5447 = vmatmul.mubr.msk.bf16.gmra.mrb[48].mxu1 %vm526_vm1, %v6229_v18 }
  0xf4   : > { %5382 = vmatprep.mubr.msk.bf16.mxu0 %vm526_vm1, %v6240_v19  ;;  %5450 = vmatprep.mubr.msk.bf16.mxu1 %vm526_vm1, %v6240_v19 }
  0xfb   : > { %5383 = vmatmul.mubr.msk.bf16.gmra.mrb[52].mxu0 %vm526_vm1, %v6243_v20  ;;  %5451 = vmatmul.mubr.msk.bf16.gmra.mrb[52].mxu1 %vm526_vm1, %v6243_v20 }
  0xfc   : > { %5386 = vmatprep.mubr.msk.bf16.mxu0 %vm526_vm1, %v6254_v21  ;;  %5454 = vmatprep.mubr.msk.bf16.mxu1 %vm526_vm1, %v6254_v21 }
 0x103   : > { %5387 = vmatmul.mubr.msk.bf16.gmra.mrb[56].mxu0 %vm526_vm1, %v6257_v22  ;;  %5455 = vmatmul.mubr.msk.bf16.gmra.mrb[56].mxu1 %vm526_vm1, %v6257_v22 }
 0x104   : > { %5390 = vmatprep.mubr.msk.bf16.mxu0 %vm526_vm1, %v6268_v23  ;;  %5458 = vmatprep.mubr.msk.bf16.mxu1 %vm526_vm1, %v6268_v23 }
 0x10b   : > { %5391 = vmatmul.mubr.msk.bf16.gmra.mrb[60].mxu0 %vm526_vm1, %v6271_v24  ;;  %5459 = vmatmul.mubr.msk.bf16.gmra.mrb[60].mxu1 %vm526_vm1, %v6271_v24 }
 0x10c   : > { %5464 = vmatprep.mubr.msk.bf16.mxu0 %vm526_vm1, %v6171_v8  ;;  %5532 = vmatprep.mubr.msk.bf16.mxu1 %vm526_vm1, %v6171_v8 }
 0x113   : > { %5465 = vmatmul.mubr.msk.bf16.vlgmr.msra.gmra.mrb[64].mxu0 %vm526_vm1, %v6182_v11  ;;  %5533 = vmatmul.mubr.msk.bf16.vlgmr.msra.gmra.mrb[64].mxu1 %vm526_vm1, %v6182_v11 }
 0x114   : > { %5565 = vmatpush3.bf16.msra.mxu1 %v3002_v40  ;;  %5497 = vmatpush3.bf16.msra.mxu0 %v2670_v41 }
 0x115   : > { %5468 = vmatprep.mubr.msk.bf16.mxu0 %vm526_vm1, %v6198_v13  ;;  %5536 = vmatprep.mubr.msk.bf16.mxu1 %vm526_vm1, %v6198_v13 }
 0x116   : > { %6004 = vmatprep.subr.msk.bf16.mxu1 %vm575_vm0, %v6525_v42  ;;  %6002 = vmatprep.subr.msk.bf16.mxu0 %vm575_vm0, %v6530_v43 }
 0x11b   : > { %5469 = vmatmul.mubr.msk.bf16.gmra.mrb[68].mxu0 %vm526_vm1, %v6201_v14  ;;  %5537 = vmatmul.mubr.msk.bf16.gmra.mrb[68].mxu1 %vm526_vm1, %v6201_v14 }
 0x11c   : > { %5472 = vmatprep.mubr.msk.bf16.mxu0 %vm526_vm1, %v6212_v15  ;;  %5540 = vmatprep.mubr.msk.bf16.mxu1 %vm526_vm1, %v6212_v15 }
 0x123   : > { %5473 = vmatmul.mubr.msk.bf16.gmra.mrb[72].mxu0 %vm526_vm1, %v6215_v16  ;;  %5541 = vmatmul.mubr.msk.bf16.gmra.mrb[72].mxu1 %vm526_vm1, %v6215_v16 }
 0x124   : > { %5476 = vmatprep.mubr.msk.bf16.mxu0 %vm526_vm1, %v6226_v17  ;;  %5544 = vmatprep.mubr.msk.bf16.mxu1 %vm526_vm1, %v6226_v17 }
 0x126   : > { %v5228_v44 = vpop.f32.mrb[0].mxu0  ;;  %v5296_v45 = vpop.f32.mrb[0].mxu1 }
 0x127   : > { %v1944_v46 = vrot.slane %v5228_v44, 7  ;;  %v785_v47 = vpop.f32.mrb[1].mxu0  ;;  %v1117_v48 = vpop.f32.mrb[1].mxu1 }
 0x128   : > { %v1941_v49 = vrot.slane %v785_v47, 7  ;;  %v5229_v50 = vpop.f32.mrb[2].mxu0  ;;  %v5297_v51 = vpop.f32.mrb[2].mxu1 }
 0x129   : > { %v2022_v53 = vsel %vm1940_vm2, 0.0, %v1944_v46  ;;  %v1945_v54 = vrot.slane %v5229_v50, 7  ;;  %v788_v55 = vpop.f32.mrb[3].mxu0  ;;  %v1120_v56 = vpop.f32.mrb[3].mxu1 }
 0x12a   : > { %v2039_v57 = vadd.f32 %v5296_v45, %v2022_v53  ;;  %v2021_v58 = vsel %vm1940_vm2, 0.0, %v1941_v49  ;;  %v1942_v59 = vrot.slane %v788_v55, 7 }
 0x12b   : > { %v2037_v60 = vadd.f32 %v2021_v58, %v1117_v48  ;;  %v1946_v61 = vsel %vm1940_vm2, %v1944_v46, %v1945_v54  ;;  %5477 = vmatmul.mubr.msk.bf16.gmra.mrb[76].mxu0 %vm526_vm1, %v6229_v18  ;;  %5545 = vmatmul.mubr.msk.bf16.gmra.mrb[76].mxu1 %vm526_vm1, %v6229_v18 }
 0x12c   : > { %v2077_v62 = vadd.f32 %v6560_v52, %v2039_v57  ;;  %v2040_v63 = vadd.f32 %v5297_v51, %v1946_v61  ;;  %v1943_v0 = vsel %vm1940_vm2, %v1941_v49, %v1942_v59  ;;  %5480 = vmatprep.mubr.msk.bf16.mxu0 %vm526_vm1, %v6240_v19  ;;  %5548 = vmatprep.mubr.msk.bf16.mxu1 %vm526_vm1, %v6240_v19 }
 0x12d   : > { %v2075_v1 = vadd.f32 %v6560_v52, %v2037_v60  ;;  %v2038_v2 = vadd.f32 %v1943_v0, %v1120_v56 }
 0x12e   : > { %2302 = vst.msk [vmem:[%s6567_s18 + $0x20] sm:$0xff] %vm526_vm1, %v2077_v62  ;;  %v2078_v3 = vadd.f32 %v6560_v52, %v2040_v63  ;;  %v5232_v4 = vpop.f32.mrb[4].mxu0  ;;  %v5300_v5 = vpop.f32.mrb[4].mxu1 }
 0x12f   : > { %2300 = vst.msk [vmem:[%s6567_s18] sm:$0xff] %vm526_vm1, %v2075_v1  ;;  %v2076_v7 = vadd.f32 %v6560_v52, %v2038_v2  ;;  %v1950_v9 = vrot.slane %v5232_v4, 7  ;;  %v801_v10 = vpop.f32.mrb[5].mxu0  ;;  %v1133_v12 = vpop.f32.mrb[5].mxu1 }
 0x130   : > { %2303 = vst.msk [vmem:[%s6567_s18 + $0x28] sm:$0xff] %vm526_vm1, %v2078_v3  ;;  %v1947_v26 = vrot.slane %v801_v10, 7  ;;  %v5233_v28 = vpop.f32.mrb[6].mxu0  ;;  %v5301_v29 = vpop.f32.mrb[6].mxu1 }
 0x131   : > { %2301 = vst.msk [vmem:[%s6567_s18 + $0x8] sm:$0xff] %vm526_vm1, %v2076_v7  ;;  %v2024_v30 = vsel %vm1940_vm2, 0.0, %v1950_v9  ;;  %v1951_v31 = vrot.slane %v5233_v28, 7  ;;  %v804_v32 = vpop.f32.mrb[7].mxu0  ;;  %v1136_v33 = vpop.f32.mrb[7].mxu1 }
 0x132   : > { %v2043_v34 = vadd.f32 %v5300_v5, %v2024_v30  ;;  %v2023_v35 = vsel %vm1940_vm2, 0.0, %v1947_v26  ;;  %v1948_v36 = vrot.slane %v804_v32, 7 }
 0x133   : > { %v2041_v37 = vadd.f32 %v2023_v35, %v1133_v12  ;;  %v1952_v38 = vsel %vm1940_vm2, %v1950_v9, %v1951_v31  ;;  %5481 = vmatmul.mubr.msk.bf16.gmra.mrb[80].mxu0 %vm526_vm1, %v6243_v20  ;;  %5549 = vmatmul.mubr.msk.bf16.gmra.mrb[80].mxu1 %vm526_vm1, %v6243_v20 }
 0x134   : > { %v2081_v39 = vadd.f32 %v6560_v52, %v2043_v34  ;;  %v2044_v40 = vadd.f32 %v5301_v29, %v1952_v38  ;;  %v1949_v41 = vsel %vm1940_vm2, %v1947_v26, %v1948_v36  ;;  %5484 = vmatprep.mubr.msk.bf16.mxu0 %vm526_vm1, %v6254_v21  ;;  %5552 = vmatprep.mubr.msk.bf16.mxu1 %vm526_vm1, %v6254_v21 }
 0x135   : > { %v2079_v44 = vadd.f32 %v6560_v52, %v2041_v37  ;;  %v2042_v45 = vadd.f32 %v1949_v41, %v1136_v33 }
 0x136   : > { %2306 = vst.msk [vmem:[%s6567_s18 + $0x60] sm:$0xff] %vm526_vm1, %v2081_v39  ;;  %v2082_v46 = vadd.f32 %v6560_v52, %v2044_v40  ;;  %v5236_v47 = vpop.f32.mrb[8].mxu0  ;;  %v5304_v48 = vpop.f32.mrb[8].mxu1 }
 0x137   : > { %2304 = vst.msk [vmem:[%s6567_s18 + $0x40] sm:$0xff] %vm526_vm1, %v2079_v44  ;;  %v2080_v49 = vadd.f32 %v6560_v52, %v2042_v45  ;;  %v1956_v50 = vrot.slane %v5236_v47, 7  ;;  %v817_v51 = vpop.f32.mrb[9].mxu0  ;;  %v1149_v53 = vpop.f32.mrb[9].mxu1 }
 0x138   : > { %2307 = vst.msk [vmem:[%s6567_s18 + $0x68] sm:$0xff] %vm526_vm1, %v2082_v46  ;;  %v1953_v54 = vrot.slane %v817_v51, 7  ;;  %v5237_v55 = vpop.f32.mrb[10].mxu0  ;;  %v5305_v56 = vpop.f32.mrb[10].mxu1 }
 0x139   : > { %2305 = vst.msk [vmem:[%s6567_s18 + $0x48] sm:$0xff] %vm526_vm1, %v2080_v49  ;;  %v2026_v57 = vsel %vm1940_vm2, 0.0, %v1956_v50  ;;  %v1957_v58 = vrot.slane %v5237_v55, 7  ;;  %v820_v59 = vpop.f32.mrb[11].mxu0  ;;  %v1152_v60 = vpop.f32.mrb[11].mxu1 }
 0x13a   : > { %v2047_v61 = vadd.f32 %v5304_v48, %v2026_v57  ;;  %v2025_v62 = vsel %vm1940_vm2, 0.0, %v1953_v54  ;;  %v1954_v63 = vrot.slane %v820_v59, 7 }
 0x13b   : > { %v2045_v0 = vadd.f32 %v2025_v62, %v1149_v53  ;;  %v1958_v1 = vsel %vm1940_vm2, %v1956_v50, %v1957_v58  ;;  %5485 = vmatmul.mubr.msk.bf16.gmra.mrb[84].mxu0 %vm526_vm1, %v6257_v22  ;;  %5553 = vmatmul.mubr.msk.bf16.gmra.mrb[84].mxu1 %vm526_vm1, %v6257_v22 }
 0x13c   : > { %v2085_v2 = vadd.f32 %v6560_v52, %v2047_v61  ;;  %v2048_v3 = vadd.f32 %v5305_v56, %v1958_v1  ;;  %v1955_v4 = vsel %vm1940_vm2, %v1953_v54, %v1954_v63  ;;  %5488 = vmatprep.mubr.msk.bf16.mxu0 %vm526_vm1, %v6268_v23  ;;  %5556 = vmatprep.mubr.msk.bf16.mxu1 %vm526_vm1, %v6268_v23 }
 0x13d   : > { %v2083_v5 = vadd.f32 %v6560_v52, %v2045_v0  ;;  %v2046_v7 = vadd.f32 %v1955_v4, %v1152_v60 }
 0x13e   : > { %2310 = vst.msk [vmem:[%s6567_s18 + $0xa0] sm:$0xff] %vm526_vm1, %v2085_v2  ;;  %v2086_v9 = vadd.f32 %v6560_v52, %v2048_v3  ;;  %v5240_v10 = vpop.f32.mrb[12].mxu0  ;;  %v5308_v12 = vpop.f32.mrb[12].mxu1 }
 0x13f   : > { %2308 = vst.msk [vmem:[%s6567_s18 + $0x80] sm:$0xff] %vm526_vm1, %v2083_v5  ;;  %v2084_v26 = vadd.f32 %v6560_v52, %v2046_v7  ;;  %v1962_v28 = vrot.slane %v5240_v10, 7  ;;  %v833_v29 = vpop.f32.mrb[13].mxu0  ;;  %v1165_v30 = vpop.f32.mrb[13].mxu1 }
 0x140   : > { %2311 = vst.msk [vmem:[%s6567_s18 + $0xa8] sm:$0xff] %vm526_vm1, %v2086_v9  ;;  %v1959_v31 = vrot.slane %v833_v29, 7  ;;  %v5241_v32 = vpop.f32.mrb[14].mxu0  ;;  %v5309_v33 = vpop.f32.mrb[14].mxu1 }
 0x141   : > { %2309 = vst.msk [vmem:[%s6567_s18 + $0x88] sm:$0xff] %vm526_vm1, %v2084_v26  ;;  %v2028_v34 = vsel %vm1940_vm2, 0.0, %v1962_v28  ;;  %v1963_v35 = vrot.slane %v5241_v32, 7  ;;  %v836_v36 = vpop.f32.mrb[15].mxu0  ;;  %v1168_v37 = vpop.f32.mrb[15].mxu1 }
 0x142   : > { %v2051_v38 = vadd.f32 %v5308_v12, %v2028_v34  ;;  %v2027_v39 = vsel %vm1940_vm2, 0.0, %v1959_v31  ;;  %v1960_v40 = vrot.slane %v836_v36, 7 }
 0x143   : > { %v2049_v41 = vadd.f32 %v2027_v39, %v1165_v30  ;;  %v1964_v44 = vsel %vm1940_vm2, %v1962_v28, %v1963_v35  ;;  %5489 = vmatmul.mubr.msk.bf16.gmra.mrb[88].mxu0 %vm526_vm1, %v6271_v24  ;;  %5557 = vmatmul.mubr.msk.bf16.gmra.mrb[88].mxu1 %vm526_vm1, %v6271_v24 }
 0x144   : > { %v2089_v45 = vadd.f32 %v6560_v52, %v2051_v38  ;;  %v2052_v46 = vadd.f32 %v5309_v33, %v1964_v44  ;;  %v1961_v47 = vsel %vm1940_vm2, %v1959_v31, %v1960_v40  ;;  %5492 = vmatprep.mubr.msk.bf16.mxu0 %vm526_vm1, %v6282_v25  ;;  %5560 = vmatprep.mubr.msk.bf16.mxu1 %vm526_vm1, %v6282_v25  ;;  %v3170_v44 = vsel %vm575_vm0, %v6530_v43, 0  ;;  %v6706_v43 = vld [vmem:[%s7415_s3 + $0x14] sm:$0x3] }
 0x145   : > { %v2087_v48 = vadd.f32 %v6560_v52, %v2049_v41  ;;  %v2050_v49 = vadd.f32 %v1961_v47, %v1168_v37  ;;  %v3502_v41 = vsel %vm575_vm0, %v6525_v42, 0  ;;  %v6701_v42 = vld [vmem:[%s7415_s3 + $0x16] sm:$0x3] }
 0x146   : > { %2314 = vst.msk [vmem:[%s6567_s18 + $0xe0] sm:$0xff] %vm526_vm1, %v2089_v45  ;;  %v2090_v50 = vadd.f32 %v6560_v52, %v2052_v46  ;;  %v5244_v51 = vpop.f32.mrb[16].mxu0  ;;  %v5312_v53 = vpop.f32.mrb[16].mxu1 }
 0x147   : > { %2312 = vst.msk [vmem:[%s6567_s18 + $0xc0] sm:$0xff] %vm526_vm1, %v2087_v48  ;;  %v2088_v54 = vadd.f32 %v6560_v52, %v2050_v49  ;;  %v1968_v55 = vrot.slane %v5244_v51, 7  ;;  %v849_v56 = vpop.f32.mrb[17].mxu0  ;;  %v1181_v57 = vpop.f32.mrb[17].mxu1 }
 0x148   : > { %2315 = vst.msk [vmem:[%s6567_s18 + $0xe8] sm:$0xff] %vm526_vm1, %v2090_v50  ;;  %v1965_v58 = vrot.slane %v849_v56, 7  ;;  %v5245_v59 = vpop.f32.mrb[18].mxu0  ;;  %v5313_v60 = vpop.f32.mrb[18].mxu1 }
 0x149   : > { %2313 = vst.msk [vmem:[%s6567_s18 + $0xc8] sm:$0xff] %vm526_vm1, %v2088_v54  ;;  %v2030_v61 = vsel %vm1940_vm2, 0.0, %v1968_v55  ;;  %v1969_v62 = vrot.slane %v5245_v59, 7  ;;  %v852_v63 = vpop.f32.mrb[19].mxu0  ;;  %v1184_v0 = vpop.f32.mrb[19].mxu1 }
 0x14a   : > { %v2055_v1 = vadd.f32 %v5312_v53, %v2030_v61  ;;  %v2029_v2 = vsel %vm1940_vm2, 0.0, %v1965_v58  ;;  %v1966_v3 = vrot.slane %v852_v63, 7 }
 0x14b   : > { %v2053_v4 = vadd.f32 %v2029_v2, %v1181_v57  ;;  %v1970_v5 = vsel %vm1940_vm2, %v1968_v55, %v1969_v62  ;;  %5493 = vmatmul.mubr.msk.bf16.gmra.mrb[92].mxu0 %vm526_vm1, %v6284_v27  ;;  %5561 = vmatmul.mubr.msk.bf16.gmra.mrb[92].mxu1 %vm526_vm1, %v6284_v27 }
 0x14c   : > { %v2093_v7 = vadd.f32 %v6560_v52, %v2055_v1  ;;  %v2056_v9 = vadd.f32 %v5313_v60, %v1970_v5  ;;  %v1967_v10 = vsel %vm1940_vm2, %v1965_v58, %v1966_v3  ;;  %5498 = vmatprep.mubr.msk.bf16.mxu0 %vm526_vm1, %v6167_v6  ;;  %5566 = vmatprep.mubr.msk.bf16.mxu1 %vm526_vm1, %v6167_v6 }
 0x14d   : > { %v2091_v12 = vadd.f32 %v6560_v52, %v2053_v4  ;;  %v2054_v26 = vadd.f32 %v1967_v10, %v1184_v0 }
 0x14e   : > { %2318 = vst.msk [vmem:[%s6567_s18 + $0x120] sm:$0xff] %vm526_vm1, %v2093_v7  ;;  %v2094_v28 = vadd.f32 %v6560_v52, %v2056_v9  ;;  %v5248_v29 = vpop.f32.mrb[20].mxu0  ;;  %v5316_v30 = vpop.f32.mrb[20].mxu1 }
 0x14f   : > { %2316 = vst.msk [vmem:[%s6567_s18 + $0x100] sm:$0xff] %vm526_vm1, %v2091_v12  ;;  %v2092_v31 = vadd.f32 %v6560_v52, %v2054_v26  ;;  %v1974_v32 = vrot.slane %v5248_v29, 7  ;;  %v865_v33 = vpop.f32.mrb[21].mxu0  ;;  %v1197_v34 = vpop.f32.mrb[21].mxu1 }
 0x150   : > { %2319 = vst.msk [vmem:[%s6567_s18 + $0x128] sm:$0xff] %vm526_vm1, %v2094_v28  ;;  %v1971_v6 = vrot.slane %v865_v33, 7  ;;  %v5249_v35 = vpop.f32.mrb[22].mxu0  ;;  %v5317_v36 = vpop.f32.mrb[22].mxu1 }
 0x151   : > { %2317 = vst.msk [vmem:[%s6567_s18 + $0x108] sm:$0xff] %vm526_vm1, %v2092_v31  ;;  %v2032_v37 = vsel %vm1940_vm2, 0.0, %v1974_v32  ;;  %v1975_v38 = vrot.slane %v5249_v35, 7  ;;  %v868_v39 = vpop.f32.mrb[23].mxu0  ;;  %v1200_v40 = vpop.f32.mrb[23].mxu1 }
 0x152   : > { %v2059_v45 = vadd.f32 %v5316_v30, %v2032_v37  ;;  %v2031_v46 = vsel %vm1940_vm2, 0.0, %v1971_v6  ;;  %v1972_v47 = vrot.slane %v868_v39, 7 }
 0x153   : > { %v2057_v48 = vadd.f32 %v2031_v46, %v1197_v34  ;;  %v1976_v49 = vsel %vm1940_vm2, %v1974_v32, %v1975_v38  ;;  %5499 = vmatmul.mubr.msk.bf16.vlgmr.msra.gmra.mrb[64].mxu0 %vm526_vm1, %v6171_v8  ;;  %5567 = vmatmul.mubr.msk.bf16.vlgmr.msra.gmra.mrb[64].mxu1 %vm526_vm1, %v6171_v8 }
 0x154   : > { %v2097_v50 = vadd.f32 %v6560_v52, %v2059_v45  ;;  %v2060_v51 = vadd.f32 %v5317_v36, %v1976_v49  ;;  %v1973_v53 = vsel %vm1940_vm2, %v1971_v6, %v1972_v47  ;;  %5667 = vmatpush3.bf16.msra.mxu1 %v3502_v41  ;;  %5599 = vmatpush3.bf16.msra.mxu0 %v3170_v44 }
 0x155   : > { %v2095_v8 = vadd.f32 %v6560_v52, %v2057_v48  ;;  %v2058_v54 = vadd.f32 %v1973_v53, %v1200_v40  ;;  %5502 = vmatprep.mubr.msk.bf16.mxu0 %vm526_vm1, %v6182_v11  ;;  %5570 = vmatprep.mubr.msk.bf16.mxu1 %vm526_vm1, %v6182_v11 }
 0x156   : > { %2322 = vst.msk [vmem:[%s6567_s18 + $0x160] sm:$0xff] %vm526_vm1, %v2097_v50  ;;  %v2098_v55 = vadd.f32 %v6560_v52, %v2060_v51  ;;  %v5252_v56 = vpop.f32.mrb[24].mxu0  ;;  %v5320_v57 = vpop.f32.mrb[24].mxu1  ;;  %6005 = vmatprep.subr.msk.bf16.mxu1 %vm575_vm0, %v6701_v42  ;;  %6003 = vmatprep.subr.msk.bf16.mxu0 %vm575_vm0, %v6706_v43 }
 0x157   : > { %2320 = vst.msk [vmem:[%s6567_s18 + $0x140] sm:$0xff] %vm526_vm1, %v2095_v8  ;;  %v2096_v58 = vadd.f32 %v6560_v52, %v2058_v54  ;;  %v1980_v59 = vrot.slane %v5252_v56, 7  ;;  %v881_v60 = vpop.f32.mrb[25].mxu0  ;;  %v1213_v61 = vpop.f32.mrb[25].mxu1 }
 0x158   : > { %2323 = vst.msk [vmem:[%s6567_s18 + $0x168] sm:$0xff] %vm526_vm1, %v2098_v55  ;;  %v1977_v62 = vrot.slane %v881_v60, 7  ;;  %v5253_v63 = vpop.f32.mrb[26].mxu0  ;;  %v5321_v0 = vpop.f32.mrb[26].mxu1 }
 0x159   : > { %2321 = vst.msk [vmem:[%s6567_s18 + $0x148] sm:$0xff] %vm526_vm1, %v2096_v58  ;;  %v2034_v1 = vsel %vm1940_vm2, 0.0, %v1980_v59  ;;  %v1981_v2 = vrot.slane %v5253_v63, 7  ;;  %v884_v3 = vpop.f32.mrb[27].mxu0  ;;  %v1216_v4 = vpop.f32.mrb[27].mxu1 }
 0x15a   : > { %v2063_v5 = vadd.f32 %v5320_v57, %v2034_v1  ;;  %v2033_v7 = vsel %vm1940_vm2, 0.0, %v1977_v62  ;;  %v1978_v9 = vrot.slane %v884_v3, 7 }
 0x15b   : > { %v2061_v10 = vadd.f32 %v2033_v7, %v1213_v61  ;;  %v1982_v12 = vsel %vm1940_vm2, %v1980_v59, %v1981_v2  ;;  %5503 = vmatmul.mubr.msk.bf16.gmra.mrb[68].mxu0 %vm526_vm1, %v6198_v13  ;;  %5571 = vmatmul.mubr.msk.bf16.gmra.mrb[68].mxu1 %vm526_vm1, %v6198_v13 }
 0x15c   : > { %v2101_v26 = vadd.f32 %v6560_v52, %v2063_v5  ;;  %v2064_v28 = vadd.f32 %v5321_v0, %v1982_v12  ;;  %v1979_v29 = vsel %vm1940_vm2, %v1977_v62, %v1978_v9  ;;  %5506 = vmatprep.mubr.msk.bf16.mxu0 %vm526_vm1, %v6201_v14  ;;  %5574 = vmatprep.mubr.msk.bf16.mxu1 %vm526_vm1, %v6201_v14 }
 0x15d   : > { %v2099_v30 = vadd.f32 %v6560_v52, %v2061_v10  ;;  %v2062_v31 = vadd.f32 %v1979_v29, %v1216_v4 }
 0x15e   : > { %2326 = vst.msk [vmem:[%s6567_s18 + $0x1a0] sm:$0xff] %vm526_vm1, %v2101_v26  ;;  %v2102_v32 = vadd.f32 %v6560_v52, %v2064_v28  ;;  %v5256_v33 = vpop.f32.mrb[28].mxu0  ;;  %v5324_v34 = vpop.f32.mrb[28].mxu1 }
 0x15f   : > { %2324 = vst.msk [vmem:[%s6567_s18 + $0x180] sm:$0xff] %vm526_vm1, %v2099_v30  ;;  %v2100_v6 = vadd.f32 %v6560_v52, %v2062_v31  ;;  %v1986_v35 = vrot.slane %v5256_v33, 7  ;;  %v897_v36 = vpop.f32.mrb[29].mxu0  ;;  %v1229_v37 = vpop.f32.mrb[29].mxu1 }
 0x160   : > { %2327 = vst.msk [vmem:[%s6567_s18 + $0x1a8] sm:$0xff] %vm526_vm1, %v2102_v32  ;;  %v1983_v38 = vrot.slane %v897_v36, 7  ;;  %v5257_v39 = vpop.f32.mrb[30].mxu0  ;;  %v5325_v40 = vpop.f32.mrb[30].mxu1 }
 0x161   : > { %2325 = vst.msk [vmem:[%s6567_s18 + $0x188] sm:$0xff] %vm526_vm1, %v2100_v6  ;;  %v2036_v41 = vsel %vm1940_vm2, 0.0, %v1986_v35  ;;  %v1987_v44 = vrot.slane %v5257_v39, 7  ;;  %v900_v45 = vpop.f32.mrb[31].mxu0  ;;  %v1232_v46 = vpop.f32.mrb[31].mxu1 }
 0x162   : > { %v2067_v47 = vadd.f32 %v5324_v34, %v2036_v41  ;;  %v2035_v48 = vsel %vm1940_vm2, 0.0, %v1983_v38  ;;  %v1984_v49 = vrot.slane %v900_v45, 7  ;;  %v6879_v41 = vld [vmem:[%s6164_s6 + $0x58] sm:$0xff]  }
 0x163   : > { %v2065_v50 = vadd.f32 %v2035_v48, %v1229_v37  ;;  %v1988_v51 = vsel %vm1940_vm2, %v1986_v35, %v1987_v44  ;;  %5507 = vmatmul.mubr.msk.bf16.gmra.mrb[72].mxu0 %vm526_vm1, %v6212_v15  ;;  %5575 = vmatmul.mubr.msk.bf16.gmra.mrb[72].mxu1 %vm526_vm1, %v6212_v15  ;;  %v6868_v35 = vld [vmem:[%s6164_s6 + $0x50] sm:$0xff]  }
 0x164   : > { %v2105_v53 = vadd.f32 %v6560_v52, %v2067_v47  ;;  %v2068_v8 = vadd.f32 %v5325_v40, %v1988_v51  ;;  %v1985_v54 = vsel %vm1940_vm2, %v1983_v38, %v1984_v49  ;;  %5510 = vmatprep.mubr.msk.bf16.mxu0 %vm526_vm1, %v6215_v16  ;;  %5578 = vmatprep.mubr.msk.bf16.mxu1 %vm526_vm1, %v6215_v16 }
 0x165   : > { %v2103_v55 = vadd.f32 %v6560_v52, %v2065_v50  ;;  %v2066_v56 = vadd.f32 %v1985_v54, %v1232_v46 }
 0x166   : > { %2330 = vst.msk [vmem:[%s6567_s18 + $0x1e0] sm:$0xff] %vm526_vm1, %v2105_v53  ;;  %v2106_v57 = vadd.f32 %v6560_v52, %v2068_v8 }
 0x167   : > { %2328 = vst.msk [vmem:[%s6567_s18 + $0x1c0] sm:$0xff] %vm526_vm1, %v2103_v55  ;;  %v2104_v58 = vadd.f32 %v6560_v52, %v2066_v56 }
 0x168   : > { %2331 = vst.msk [vmem:[%s6567_s18 + $0x1e8] sm:$0xff] %vm526_vm1, %v2106_v57 }
 0x169   : > { %2329 = vst.msk [vmem:[%s6567_s18 + $0x1c8] sm:$0xff] %vm526_vm1, %v2104_v58 }
 0x16b   : > { %5511 = vmatmul.mubr.msk.bf16.gmra.mrb[76].mxu0 %vm526_vm1, %v6226_v17  ;;  %5579 = vmatmul.mubr.msk.bf16.gmra.mrb[76].mxu1 %vm526_vm1, %v6226_v17 }
 0x16c   : > { %5514 = vmatprep.mubr.msk.bf16.mxu0 %vm526_vm1, %v6229_v18  ;;  %5582 = vmatprep.mubr.msk.bf16.mxu1 %vm526_vm1, %v6229_v18 }
 0x173   : > { %5515 = vmatmul.mubr.msk.bf16.gmra.mrb[80].mxu0 %vm526_vm1, %v6240_v19  ;;  %5583 = vmatmul.mubr.msk.bf16.gmra.mrb[80].mxu1 %vm526_vm1, %v6240_v19 }
 0x174   : > { %5518 = vmatprep.mubr.msk.bf16.mxu0 %vm526_vm1, %v6243_v20  ;;  %5586 = vmatprep.mubr.msk.bf16.mxu1 %vm526_vm1, %v6243_v20  ;;  %v6814_v20 = vld [vmem:[%s6164_s6 + $0x8] sm:$0xff]  }
 0x17b   : > { %5519 = vmatmul.mubr.msk.bf16.gmra.mrb[84].mxu0 %vm526_vm1, %v6254_v21  ;;  %5587 = vmatmul.mubr.msk.bf16.gmra.mrb[84].mxu1 %vm526_vm1, %v6254_v21  ;;  %v3666_v21 = vsel %vm575_vm0, %v6701_v42, 0 }
 0x17c   : > { %5522 = vmatprep.mubr.msk.bf16.mxu0 %vm526_vm1, %v6257_v22  ;;  %5590 = vmatprep.mubr.msk.bf16.mxu1 %vm526_vm1, %v6257_v22  ;;  %v3334_v22 = vsel %vm575_vm0, %v6706_v43, 0 }
 0x183   : > { %5523 = vmatmul.mubr.msk.bf16.gmra.mrb[88].mxu0 %vm526_vm1, %v6268_v23  ;;  %5591 = vmatmul.mubr.msk.bf16.gmra.mrb[88].mxu1 %vm526_vm1, %v6268_v23 }
 0x184   : > { %5526 = vmatprep.mubr.msk.bf16.mxu0 %vm526_vm1, %v6271_v24  ;;  %5594 = vmatprep.mubr.msk.bf16.mxu1 %vm526_vm1, %v6271_v24 }
 0x18b   : > { %5527 = vmatmul.mubr.msk.bf16.gmra.mrb[92].mxu0 %vm526_vm1, %v6282_v25  ;;  %5595 = vmatmul.mubr.msk.bf16.gmra.mrb[92].mxu1 %vm526_vm1, %v6282_v25 }
 0x18c   : > { %5600 = vmatprep.mubr.msk.bf16.mxu0 %vm526_vm1, %v6814_v20  ;;  %5668 = vmatprep.mubr.msk.bf16.mxu1 %vm526_vm1, %v6814_v20 }
 0x193   : > { %5601 = vmatmul.mubr.msk.bf16.vlgmr.msra.gmra.mrb[96].mxu0 %vm526_vm1, %v6182_v11  ;;  %5669 = vmatmul.mubr.msk.bf16.vlgmr.msra.gmra.mrb[96].mxu1 %vm526_vm1, %v6182_v11 }
 0x194   : > { %5701 = vmatpush3.bf16.msra.mxu1 %v3666_v21  ;;  %5633 = vmatpush3.bf16.msra.mxu0 %v3334_v22 }
 0x195   : > { %5604 = vmatprep.mubr.msk.bf16.mxu0 %vm526_vm1, %v6198_v13  ;;  %5672 = vmatprep.mubr.msk.bf16.mxu1 %vm526_vm1, %v6198_v13 }
 0x19b   : > { %5605 = vmatmul.mubr.msk.bf16.gmra.mrb[100].mxu0 %vm526_vm1, %v6201_v14  ;;  %5673 = vmatmul.mubr.msk.bf16.gmra.mrb[100].mxu1 %vm526_vm1, %v6201_v14 }
 0x19c   : > { %5608 = vmatprep.mubr.msk.bf16.mxu0 %vm526_vm1, %v6212_v15  ;;  %5676 = vmatprep.mubr.msk.bf16.mxu1 %vm526_vm1, %v6212_v15 }
 0x1a3   : > { %5609 = vmatmul.mubr.msk.bf16.gmra.mrb[104].mxu0 %vm526_vm1, %v6215_v16  ;;  %5677 = vmatmul.mubr.msk.bf16.gmra.mrb[104].mxu1 %vm526_vm1, %v6215_v16 }
 0x1a4   : > { %5612 = vmatprep.mubr.msk.bf16.mxu0 %vm526_vm1, %v6226_v17  ;;  %5680 = vmatprep.mubr.msk.bf16.mxu1 %vm526_vm1, %v6226_v17 }
 0x1a6   : > { %v5364_v11 = vpop.f32.mrb[32].mxu0  ;;  %v5432_v13 = vpop.f32.mrb[32].mxu1 }
 0x1a7   : > { %v1449_v14 = vpop.f32.mrb[33].mxu0  ;;  %v1781_v23 = vpop.f32.mrb[33].mxu1  ;;  %v2143_v15 = vrot.slane %v5432_v13, 1 }
 0x1a8   : > { %v5365_v24 = vpop.f32.mrb[34].mxu0  ;;  %v5433_v25 = vpop.f32.mrb[34].mxu1  ;;  %v2140_v60 = vrot.slane %v1781_v23, 1 }
 0x1a9   : > { %v2144_v42 = vrot.slane %v5433_v25, 1  ;;  %v1452_v43 = vpop.f32.mrb[35].mxu0  ;;  %v1784_v59 = vpop.f32.mrb[35].mxu1 }
 0x1aa   : > { %v2141_v61 = vrot.slane %v1784_v59, 1 }
 0x1ab   : > { %v2221_v16 = vsel %vm2139_vm3, %v2144_v42, 0.0  ;;  %5613 = vmatmul.mubr.msk.bf16.gmra.mrb[108].mxu0 %vm526_vm1, %v6229_v18  ;;  %5681 = vmatmul.mubr.msk.bf16.gmra.mrb[108].mxu1 %vm526_vm1, %v6229_v18  ;;  %v2145_v17 = vsel %vm2139_vm3, %v2143_v15, %v2144_v42 }
 0x1ac   : > { %v2239_v62 = vadd.f32 %v5365_v24, %v2221_v16  ;;  %v2220_v63 = vsel %vm2139_vm3, %v2141_v61, 0.0  ;;  %v2238_v0 = vadd.f32 %v5364_v11, %v2145_v17  ;;  %v2142_v1 = vsel %vm2139_vm3, %v2140_v60, %v2141_v61  ;;  %5616 = vmatprep.mubr.msk.bf16.mxu0 %vm526_vm1, %v6240_v19  ;;  %5684 = vmatprep.mubr.msk.bf16.mxu1 %vm526_vm1, %v6240_v19 }
 0x1ad   : > { %v2237_v2 = vadd.f32 %v2220_v63, %v1452_v43  ;;  %v2236_v3 = vadd.f32 %v2142_v1, %v1449_v14  ;;  %v6894_v14 = vld [vmem:[%s6164_s6 + $0x60] sm:$0xff]   ;;  %v6905_v43 = vld [vmem:[%s6164_s6 + $0x68] sm:$0xff]  }
 0x1ae   : > { %v5368_v4 = vpop.f32.mrb[36].mxu0  ;;  %v5436_v5 = vpop.f32.mrb[36].mxu1  ;;  %v2270_v18 = vadd.f32 %v6560_v52, %v2238_v0  ;;  %v2271_v33 = vadd.f32 %v6560_v52, %v2239_v62 }
 0x1af   : > { %v1465_v7 = vpop.f32.mrb[37].mxu0  ;;  %v1797_v9 = vpop.f32.mrb[37].mxu1  ;;  %v2268_v10 = vadd.f32 %v6560_v52, %v2236_v3  ;;  %v2149_v28 = vrot.slane %v5436_v5, 1  ;;  %v2269_v36 = vadd.f32 %v6560_v52, %v2237_v2 }
 0x1b0   : > { %v5437_v12 = vpop.f32.mrb[38].mxu1  ;;  %2368 = vrot.lane.b32.xlu1 %v2270_v18, %s6091_s14  ;;  %v5369_v26 = vpop.f32.mrb[38].mxu0  ;;  %v2146_v31 = vrot.slane %v1797_v9, 1 }
 0x1b1   : > { %v2150_v29 = vrot.slane %v5437_v12, 1  ;;  %v1800_v30 = vpop.f32.mrb[39].mxu1  ;;  %2364 = vrot.lane.b32.xlu0 %v2268_v10, %s6091_s14  ;;  %v1468_v19 = vpop.f32.mrb[39].mxu0 }
 0x1b2   : > { %v2147_v32 = vrot.slane %v1800_v30, 1 }
 0x1b3   : > { %v2151_v34 = vsel %vm2139_vm3, %v2149_v28, %v2150_v29  ;;  %v2223_v6 = vsel %vm2139_vm3, %v2150_v29, 0.0  ;;  %5617 = vmatmul.mubr.msk.bf16.gmra.mrb[112].mxu0 %vm526_vm1, %v6868_v35  ;;  %5685 = vmatmul.mubr.msk.bf16.gmra.mrb[112].mxu1 %vm526_vm1, %v6868_v35  ;;  %v6920_v28 = vld [vmem:[%s6164_s6 + $0x70] sm:$0xff]  }
 0x1b4   : > { %v2243_v37 = vadd.f32 %v5369_v26, %v2223_v6  ;;  %v2148_v38 = vsel %vm2139_vm3, %v2146_v31, %v2147_v32  ;;  %v2222_v39 = vsel %vm2139_vm3, %v2147_v32, 0.0  ;;  %2370 = vrot.lane.b32.xlu1 %v2271_v33, %s6091_s14  ;;  %v2242_v40 = vadd.f32 %v5368_v4, %v2151_v34  ;;  %5620 = vmatprep.mubr.msk.bf16.mxu0 %vm526_vm1, %v6879_v41  ;;  %v6931_v33 = vld [vmem:[%s6164_s6 + $0x78] sm:$0xff]  }
 0x1b5   : > { %v2241_v44 = vadd.f32 %v2222_v39, %v1468_v19  ;;  %2366 = vrot.lane.b32.xlu0 %v2269_v36, %s6091_s14  ;;  %5688 = vmatprep.mubr.msk.bf16.mxu1 %vm526_vm1, %v6879_v41  ;;  %v2240_v45 = vadd.f32 %v2148_v38, %v1465_v7 }
 0x1b6   : > { %v2275_v46 = vadd.f32 %v6560_v52, %v2243_v37  ;;  %v5372_v47 = vpop.f32.mrb[40].mxu0  ;;  %v5440_v48 = vpop.f32.mrb[40].mxu1  ;;  %v2274_v49 = vadd.f32 %v6560_v52, %v2242_v40 }
 0x1b7   : > { %v1481_v50 = vpop.f32.mrb[41].mxu0  ;;  %v1813_v51 = vpop.f32.mrb[41].mxu1  ;;  %v2155_v54 = vrot.slane %v5440_v48, 1  ;;  %v2273_v58 = vadd.f32 %v6560_v52, %v2241_v44  ;;  %v2272_v23 = vadd.f32 %v6560_v52, %v2240_v45 }
 0x1b8   : > { %v5441_v53 = vpop.f32.mrb[42].mxu1  ;;  %2378 = vrot.lane.b32.xlu1 %v2275_v46, %s6091_s14  ;;  %v5373_v8 = vpop.f32.mrb[42].mxu0  ;;  %v2152_v21 = vrot.slane %v1813_v51, 1 }
 0x1b9   : > { %v2156_v55 = vrot.slane %v5441_v53, 1  ;;  %v1816_v56 = vpop.f32.mrb[43].mxu1  ;;  %2376 = vrot.lane.b32.xlu0 %v2274_v49, %s6091_s14  ;;  %v1484_v57 = vpop.f32.mrb[43].mxu0 }
 0x1ba   : > { %v2153_v22 = vrot.slane %v1816_v56, 1 }
 0x1bb   : > { %v2157_v11 = vsel %vm2139_vm3, %v2155_v54, %v2156_v55  ;;  %v2225_v13 = vsel %vm2139_vm3, %v2156_v55, 0.0  ;;  %5621 = vmatmul.mubr.msk.bf16.gmra.mrb[116].mxu0 %vm526_vm1, %v6894_v14  ;;  %5689 = vmatmul.mubr.msk.bf16.gmra.mrb[116].mxu1 %vm526_vm1, %v6894_v14 }
 0x1bc   : > { %v2247_v24 = vadd.f32 %v5373_v8, %v2225_v13  ;;  %v2154_v25 = vsel %vm2139_vm3, %v2152_v21, %v2153_v22  ;;  %v2224_v15 = vsel %vm2139_vm3, %v2153_v22, 0.0  ;;  %2374 = vrot.lane.b32.xlu1 %v2273_v58, %s6091_s14  ;;  %v2246_v42 = vadd.f32 %v5372_v47, %v2157_v11  ;;  %5624 = vmatprep.mubr.msk.bf16.mxu0 %vm526_vm1, %v6905_v43  ;;  %v6055_v11 = vld [vmem:[%s6164_s6] sm:$0xff]  }
 0x1bd   : > { %v2245_v59 = vadd.f32 %v2224_v15, %v1484_v57  ;;  %2372 = vrot.lane.b32.xlu0 %v2272_v23, %s6091_s14  ;;  %5692 = vmatprep.mubr.msk.bf16.mxu1 %vm526_vm1, %v6905_v43  ;;  %v2244_v60 = vadd.f32 %v2154_v25, %v1481_v50 }
 0x1be   : > { %v2279_v61 = vadd.f32 %v6560_v52, %v2247_v24  ;;  %v5376_v16 = vpop.f32.mrb[44].mxu0  ;;  %v5444_v17 = vpop.f32.mrb[44].mxu1  ;;  %v2278_v62 = vadd.f32 %v6560_v52, %v2246_v42 }
 0x1bf   : > { %v1497_v63 = vpop.f32.mrb[45].mxu0  ;;  %v1829_v0 = vpop.f32.mrb[45].mxu1  ;;  %v2161_v3 = vrot.slane %v5444_v17, 1  ;;  %v2277_v7 = vadd.f32 %v6560_v52, %v2245_v59  ;;  %v2276_v29 = vadd.f32 %v6560_v52, %v2244_v60 }
 0x1c0   : > { %v5445_v1 = vpop.f32.mrb[46].mxu1  ;;  %2386 = vrot.lane.b32.xlu1 %v2279_v61, %s6091_s14  ;;  %v5377_v2 = vpop.f32.mrb[46].mxu0  ;;  %v2158_v9 = vrot.slane %v1829_v0, 1 }
 0x1c1   : > { %v2162_v4 = vrot.slane %v5445_v1, 1  ;;  %v1832_v5 = vpop.f32.mrb[47].mxu1  ;;  %2384 = vrot.lane.b32.xlu0 %v2278_v62, %s6091_s14  ;;  %v1500_v18 = vpop.f32.mrb[47].mxu0 }
 0x1c2   : > { %v2159_v10 = vrot.slane %v1832_v5, 1 }
 0x1c3   : > { %v2163_v12 = vsel %vm2139_vm3, %v2161_v3, %v2162_v4  ;;  %v2227_v26 = vsel %vm2139_vm3, %v2162_v4, 0.0  ;;  %5625 = vmatmul.mubr.msk.bf16.gmra.mrb[120].mxu0 %vm526_vm1, %v6920_v28  ;;  %5693 = vmatmul.mubr.msk.bf16.gmra.mrb[120].mxu1 %vm526_vm1, %v6920_v28 }
 0x1c4   : > { %v2251_v30 = vadd.f32 %v5377_v2, %v2227_v26  ;;  %v2160_v19 = vsel %vm2139_vm3, %v2158_v9, %v2159_v10  ;;  %v2226_v31 = vsel %vm2139_vm3, %v2159_v10, 0.0  ;;  %2382 = vrot.lane.b32.xlu1 %v2277_v7, %s6091_s14  ;;  %v2250_v32 = vadd.f32 %v5376_v16, %v2163_v12  ;;  %5628 = vmatprep.mubr.msk.bf16.mxu0 %vm526_vm1, %v6931_v33  ;;  %v6056_v12 = vld [vmem:[%s6164_s6 + $0x10] sm:$0xff]  }
 0x1c5   : > { %v2249_v34 = vadd.f32 %v2226_v31, %v1500_v18  ;;  %2380 = vrot.lane.b32.xlu0 %v2276_v29, %s6091_s14  ;;  %5696 = vmatprep.mubr.msk.bf16.mxu1 %vm526_vm1, %v6931_v33  ;;  %v2248_v6 = vadd.f32 %v2160_v19, %v1497_v63 }
 0x1c6   : > { %v2283_v36 = vadd.f32 %v6560_v52, %v2251_v30  ;;  %v5380_v37 = vpop.f32.mrb[48].mxu0  ;;  %v5448_v38 = vpop.f32.mrb[48].mxu1  ;;  %v2282_v39 = vadd.f32 %v6560_v52, %v2250_v32 }
 0x1c7   : > { %v1513_v40 = vpop.f32.mrb[49].mxu0  ;;  %v1845_v44 = vpop.f32.mrb[49].mxu1  ;;  %v2167_v47 = vrot.slane %v5448_v38, 1  ;;  %v2281_v51 = vadd.f32 %v6560_v52, %v2249_v34  ;;  %v2280_v56 = vadd.f32 %v6560_v52, %v2248_v6 }
 0x1c8   : > { %v5449_v45 = vpop.f32.mrb[50].mxu1  ;;  %2394 = vrot.lane.b32.xlu1 %v2283_v36, %s6091_s14  ;;  %v5381_v46 = vpop.f32.mrb[50].mxu0  ;;  %v2164_v53 = vrot.slane %v1845_v44, 1 }
 0x1c9   : > { %v2168_v48 = vrot.slane %v5449_v45, 1  ;;  %v1848_v49 = vpop.f32.mrb[51].mxu1  ;;  %2392 = vrot.lane.b32.xlu0 %v2282_v39, %s6091_s14  ;;  %v1516_v50 = vpop.f32.mrb[51].mxu0 }
 0x1ca   : > { %v2165_v8 = vrot.slane %v1848_v49, 1  ;;  %v6057_v49 = vld [vmem:[%s6164_s6 + $0x18] sm:$0xff]  }
 0x1cb   : > { %v2169_v54 = vsel %vm2139_vm3, %v2167_v47, %v2168_v48  ;;  %v2229_v55 = vsel %vm2139_vm3, %v2168_v48, 0.0  ;;  %5629 = vmatmul.mubr.msk.bf16.gmra.mrb[124].mxu0 %vm526_vm1, %v6284_v27  ;;  %5697 = vmatmul.mubr.msk.bf16.gmra.mrb[124].mxu1 %vm526_vm1, %v6284_v27 }
 0x1cc   : > { %v2255_v57 = vadd.f32 %v5381_v46, %v2229_v55  ;;  %v2166_v58 = vsel %vm2139_vm3, %v2164_v53, %v2165_v8  ;;  %v2228_v21 = vsel %vm2139_vm3, %v2165_v8, 0.0  ;;  %2390 = vrot.lane.b32.xlu1 %v2281_v51, %s6091_s14  ;;  %v2254_v22 = vadd.f32 %v5380_v37, %v2169_v54  ;;  %5634 = vmatprep.mubr.msk.bf16.mxu0 %vm526_vm1, %v6055_v11  ;;  %v6058_v55 = vld [vmem:[%s6164_s6 + $0x20] sm:$0xff]  }
 0x1cd   : > { %v2253_v13 = vadd.f32 %v2228_v21, %v1516_v50  ;;  %2388 = vrot.lane.b32.xlu0 %v2280_v56, %s6091_s14  ;;  %5702 = vmatprep.mubr.msk.bf16.mxu1 %vm526_vm1, %v6055_v11  ;;  %v2252_v23 = vadd.f32 %v2166_v58, %v1513_v40 }
 0x1ce   : > { %v2287_v27 = vadd.f32 %v6560_v52, %v2255_v57  ;;  %v5384_v24 = vpop.f32.mrb[52].mxu0  ;;  %v5452_v25 = vpop.f32.mrb[52].mxu1  ;;  %v2286_v15 = vadd.f32 %v6560_v52, %v2254_v22 }
 0x1cf   : > { %v1529_v42 = vpop.f32.mrb[53].mxu0  ;;  %v1861_v59 = vpop.f32.mrb[53].mxu1  ;;  %v2173_v16 = vrot.slane %v5452_v25, 1  ;;  %v2285_v0 = vadd.f32 %v6560_v52, %v2253_v13  ;;  %v2284_v5 = vadd.f32 %v6560_v52, %v2252_v23 }
 0x1d0   : > { %v5453_v60 = vpop.f32.mrb[54].mxu1  ;;  %2402 = vrot.lane.b32.xlu1 %v2287_v27, %s6091_s14  ;;  %v5385_v61 = vpop.f32.mrb[54].mxu0  ;;  %v2170_v1 = vrot.slane %v1861_v59, 1 }
 0x1d1   : > { %v2174_v17 = vrot.slane %v5453_v60, 1  ;;  %v1864_v62 = vpop.f32.mrb[55].mxu1  ;;  %2400 = vrot.lane.b32.xlu0 %v2286_v15, %s6091_s14  ;;  %v1532_v63 = vpop.f32.mrb[55].mxu0 }
 0x1d2   : > { %v2171_v2 = vrot.slane %v1864_v62, 1 }
 0x1d3   : > { %v2175_v3 = vsel %vm2139_vm3, %v2173_v16, %v2174_v17  ;;  %v2231_v4 = vsel %vm2139_vm3, %v2174_v17, 0.0  ;;  %5635 = vmatmul.mubr.msk.bf16.vlgmr.msra.gmra.mrb[96].mxu0 %vm526_vm1, %v6814_v20  ;;  %5703 = vmatmul.mubr.msk.bf16.vlgmr.msra.gmra.mrb[96].mxu1 %vm526_vm1, %v6814_v20 }
 0x1d4   : > { %v2259_v18 = vadd.f32 %v5385_v61, %v2231_v4  ;;  %v2172_v7 = vsel %vm2139_vm3, %v2170_v1, %v2171_v2  ;;  %v2230_v9 = vsel %vm2139_vm3, %v2171_v2, 0.0  ;;  %2398 = vrot.lane.b32.xlu1 %v2285_v0, %s6091_s14  ;;  %v2258_v10 = vadd.f32 %v5384_v24, %v2175_v3  ;;  %5638 = vmatprep.mubr.msk.bf16.mxu0 %vm526_vm1, %v6056_v12 }
 0x1d5   : > { %v2257_v26 = vadd.f32 %v2230_v9, %v1532_v63  ;;  %2396 = vrot.lane.b32.xlu0 %v2284_v5, %s6091_s14  ;;  %5706 = vmatprep.mubr.msk.bf16.mxu1 %vm526_vm1, %v6056_v12  ;;  %v2256_v29 = vadd.f32 %v2172_v7, %v1529_v42  ;;  %v6060_v63 = vld [vmem:[%s6164_s6 + $0x28] sm:$0xff]   ;;  %v6061_v5 = vld [vmem:[%s6164_s6 + $0x30] sm:$0xff]  }
 0x1d6   : > { %v2291_v20 = vadd.f32 %v6560_v52, %v2259_v18  ;;  %v5388_v30 = vpop.f32.mrb[56].mxu0  ;;  %v5456_v19 = vpop.f32.mrb[56].mxu1  ;;  %v2290_v31 = vadd.f32 %v6560_v52, %v2258_v10 }
 0x1d7   : > { %v1545_v32 = vpop.f32.mrb[57].mxu0  ;;  %v1877_v34 = vpop.f32.mrb[57].mxu1  ;;  %v2179_v37 = vrot.slane %v5456_v19, 1  ;;  %v2289_v44 = vadd.f32 %v6560_v52, %v2257_v26  ;;  %v2288_v50 = vadd.f32 %v6560_v52, %v2256_v29  ;;  %v6997_v52 = vld [vmem:[%s7416_s4] ss:$0 sm:$0xff]  ;;  %v6062_v26 = vld [vmem:[%s6164_s6 + $0x38] sm:$0xff]  }
 0x1d8   : > { %v5457_v6 = vpop.f32.mrb[58].mxu1  ;;  %2410 = vrot.lane.b32.xlu1 %v2291_v20, %s6091_s14  ;;  %v5389_v36 = vpop.f32.mrb[58].mxu0  ;;  %v2176_v45 = vrot.slane %v1877_v34, 1  ;;  %v6063_v20 = vld [vmem:[%s6164_s6 + $0x40] sm:$0xff]  }
 0x1d9   : > { %v2180_v38 = vrot.slane %v5457_v6, 1  ;;  %v1880_v39 = vpop.f32.mrb[59].mxu1  ;;  %2408 = vrot.lane.b32.xlu0 %v2290_v31, %s6091_s14  ;;  %v1548_v40 = vpop.f32.mrb[59].mxu0 }
 0x1da   : > { %v2177_v46 = vrot.slane %v1880_v39, 1 }
 0x1db   : > { %v2181_v47 = vsel %vm2139_vm3, %v2179_v37, %v2180_v38  ;;  %v2233_v48 = vsel %vm2139_vm3, %v2180_v38, 0.0  ;;  %5639 = vmatmul.mubr.msk.bf16.gmra.mrb[100].mxu0 %vm526_vm1, %v6057_v49  ;;  %5707 = vmatmul.mubr.msk.bf16.gmra.mrb[100].mxu1 %vm526_vm1, %v6057_v49 }
 0x1dc   : > { %v2263_v51 = vadd.f32 %v5389_v36, %v2233_v48  ;;  %v2178_v53 = vsel %vm2139_vm3, %v2176_v45, %v2177_v46  ;;  %v2232_v8 = vsel %vm2139_vm3, %v2177_v46, 0.0  ;;  %2406 = vrot.lane.b32.xlu1 %v2289_v44, %s6091_s14  ;;  %v2262_v54 = vadd.f32 %v5388_v30, %v2181_v47  ;;  %5642 = vmatprep.mubr.msk.bf16.mxu0 %vm526_vm1, %v6058_v55  ;;  %v6064_v30 = vld [vmem:[%s6164_s6 + $0x48] sm:$0xff]  }
 0x1dd   : > { %v2261_v56 = vadd.f32 %v2232_v8, %v1548_v40  ;;  %2404 = vrot.lane.b32.xlu0 %v2288_v50, %s6091_s14  ;;  %5710 = vmatprep.mubr.msk.bf16.mxu1 %vm526_vm1, %v6058_v55  ;;  %v2260_v57 = vadd.f32 %v2178_v53, %v1545_v32 }
 0x1de   : > { %v2295_v58 = vadd.f32 %v6997_v52, %v2263_v51  ;;  %v5392_v21 = vpop.f32.mrb[60].mxu0  ;;  %v5460_v22 = vpop.f32.mrb[60].mxu1  ;;  %v2294_v11 = vadd.f32 %v6997_v52, %v2262_v54 }
 0x1df   : > { %v1561_v13 = vpop.f32.mrb[61].mxu0  ;;  %v1893_v23 = vpop.f32.mrb[61].mxu1  ;;  %v2185_v25 = vrot.slane %v5460_v22, 1  ;;  %v2293_v60 = vadd.f32 %v6997_v52, %v2261_v56  ;;  %v2292_v0 = vadd.f32 %v6997_v52, %v2260_v57 }
 0x1e0   : > { %v5461_v27 = vpop.f32.mrb[62].mxu1  ;;  %2418 = vrot.lane.b32.xlu1 %v2295_v58, %s6091_s14  ;;  %v5393_v24 = vpop.f32.mrb[62].mxu0  ;;  %v2182_v61 = vrot.slane %v1893_v23, 1 }
 0x1e1   : > { %v2186_v15 = vrot.slane %v5461_v27, 1  ;;  %v1896_v42 = vpop.f32.mrb[63].mxu1  ;;  %2416 = vrot.lane.b32.xlu0 %v2294_v11, %s6091_s14  ;;  %v1564_v59 = vpop.f32.mrb[63].mxu0 }
 0x1e2   : > { %v2183_v16 = vrot.slane %v1896_v42, 1 }
 0x1e3   : > { %v2187_v17 = vsel %vm2139_vm3, %v2185_v25, %v2186_v15  ;;  %v2235_v62 = vsel %vm2139_vm3, %v2186_v15, 0.0  ;;  %5643 = vmatmul.mubr.msk.bf16.gmra.mrb[104].mxu0 %vm526_vm1, %v6060_v63  ;;  %5711 = vmatmul.mubr.msk.bf16.gmra.mrb[104].mxu1 %vm526_vm1, %v6060_v63 }
 0x1e4   : > { %v2267_v1 = vadd.f32 %v5393_v24, %v2235_v62  ;;  %v2184_v2 = vsel %vm2139_vm3, %v2182_v61, %v2183_v16  ;;  %v2234_v3 = vsel %vm2139_vm3, %v2183_v16, 0.0  ;;  %2414 = vrot.lane.b32.xlu1 %v2293_v60, %s6091_s14  ;;  %v2266_v4 = vadd.f32 %v5392_v21, %v2187_v17  ;;  %5646 = vmatprep.mubr.msk.bf16.mxu0 %vm526_vm1, %v6061_v5 }
 0x1e5   : > { %v2265_v18 = vadd.f32 %v2234_v3, %v1564_v59  ;;  %2412 = vrot.lane.b32.xlu0 %v2292_v0, %s6091_s14  ;;  %5714 = vmatprep.mubr.msk.bf16.mxu1 %vm526_vm1, %v6061_v5  ;;  %v2264_v7 = vadd.f32 %v2184_v2, %v1561_v13 }
 0x1e6   : > { %v2299_v9 = vadd.f32 %v6997_v52, %v2267_v1  ;;  %v2298_v10 = vadd.f32 %v6997_v52, %v2266_v4 }
 0x1e7   : > { %v2297_v12 = vadd.f32 %v6997_v52, %v2265_v18  ;;  %v2296_v29 = vadd.f32 %v6997_v52, %v2264_v7 }
 0x1e8   : > { %2426 = vrot.lane.b32.xlu1 %v2299_v9, %s6091_s14 }
 0x1e9   : > { %2424 = vrot.lane.b32.xlu0 %v2298_v10, %s6091_s14 }
 0x1eb   : > { %5647 = vmatmul.mubr.msk.bf16.gmra.mrb[108].mxu0 %vm526_vm1, %v6062_v26  ;;  %5715 = vmatmul.mubr.msk.bf16.gmra.mrb[108].mxu1 %vm526_vm1, %v6062_v26 }
 0x1ec   : > { %2422 = vrot.lane.b32.xlu1 %v2297_v12, %s6091_s14  ;;  %5650 = vmatprep.mubr.msk.bf16.mxu0 %vm526_vm1, %v6063_v20 }
 0x1ed   : > { %2420 = vrot.lane.b32.xlu0 %v2296_v29, %s6091_s14  ;;  %5718 = vmatprep.mubr.msk.bf16.mxu1 %vm526_vm1, %v6063_v20 }
 0x1f3   : > { %5651 = vmatmul.mubr.msk.bf16.gmra.mrb[112].mxu0 %vm526_vm1, %v6064_v30  ;;  %5719 = vmatmul.mubr.msk.bf16.gmra.mrb[112].mxu1 %vm526_vm1, %v6064_v30 }
 0x1f4   : > { %5654 = vmatprep.mubr.msk.bf16.mxu0 %vm526_vm1, %v6868_v35  ;;  %5722 = vmatprep.mubr.msk.bf16.mxu1 %vm526_vm1, %v6868_v35 }
 0x1fb   : > { %5655 = vmatmul.mubr.msk.bf16.gmra.mrb[116].mxu0 %vm526_vm1, %v6879_v41  ;;  %5723 = vmatmul.mubr.msk.bf16.gmra.mrb[116].mxu1 %vm526_vm1, %v6879_v41 }
 0x1fc   : > { %5658 = vmatprep.mubr.msk.bf16.mxu0 %vm526_vm1, %v6894_v14  ;;  %5726 = vmatprep.mubr.msk.bf16.mxu1 %vm526_vm1, %v6894_v14 }
 0x203   : > { %5659 = vmatmul.mubr.msk.bf16.gmra.mrb[120].mxu0 %vm526_vm1, %v6905_v43  ;;  %5727 = vmatmul.mubr.msk.bf16.gmra.mrb[120].mxu1 %vm526_vm1, %v6905_v43 }
 0x204   : > { %5662 = vmatprep.mubr.msk.bf16.mxu0 %vm526_vm1, %v6920_v28  ;;  %5730 = vmatprep.mubr.msk.bf16.mxu1 %vm526_vm1, %v6920_v28 }
 0x20b   : > { %5663 = vmatmul.mubr.msk.bf16.gmra.mrb[124].mxu0 %vm526_vm1, %v6931_v33  ;;  %5731 = vmatmul.mubr.msk.bf16.gmra.mrb[124].mxu1 %vm526_vm1, %v6931_v33 }
 0x222   : > { %v2369_v35 = vpop.permute.xlu1 %2368 }
 0x223   : > { %2463 = vst.msk [vmem:[%s6567_s18 + $0x20] sm:$0xff] %vm2460_vm4, %v2369_v35  ;;  %v2365_v41 = vpop.permute.xlu0 %2364 }
 0x224   : > { %2461 = vst.msk [vmem:[%s6567_s18] sm:$0xff] %vm2460_vm4, %v2365_v41 }
 0x226   : > { %v5568_v14 = vpop.f32.mrb[64].mxu1  ;;  %v2371_v43 = vpop.permute.xlu1 %2370 }
 0x227   : > { %2464 = vst.msk [vmem:[%s6567_s18 + $0x28] sm:$0xff] %vm2460_vm4, %v2371_v43  ;;  %v5500_v19 = vpop.f32.mrb[64].mxu0  ;;  %v3038_v28 = vpop.f32.mrb[65].mxu1 }
 0x228   : > { %v3864_v31 = vrot.slane %v5500_v19, 7  ;;  %v2367_v32 = vpop.permute.xlu0 %2366  ;;  %v2706_v34 = vpop.f32.mrb[65].mxu0 }
 0x229   : > { %2462 = vst.msk [vmem:[%s6567_s18 + $0x8] sm:$0xff] %vm2460_vm4, %v2367_v32  ;;  %v3861_v33 = vrot.slane %v2706_v34, 7  ;;  %v5501_v6 = vpop.f32.mrb[66].mxu0  ;;  %v5569_v36 = vpop.f32.mrb[66].mxu1 }
 0x22a   : > { %v3942_v37 = vsel %vm1940_vm2, 0.0, %v3864_v31  ;;  %v3865_v38 = vrot.slane %v5501_v6, 7  ;;  %v2709_v39 = vpop.f32.mrb[67].mxu0  ;;  %v3041_v40 = vpop.f32.mrb[67].mxu1 }
 0x22b   : > { %v3959_v44 = vadd.f32 %v5568_v14, %v3942_v37  ;;  %v3941_v45 = vsel %vm1940_vm2, 0.0, %v3861_v33  ;;  %v3862_v46 = vrot.slane %v2709_v39, 7  ;;  %v2379_v47 = vpop.permute.xlu1 %2378 }
 0x22c   : > { %v3957_v48 = vadd.f32 %v3941_v45, %v3038_v28  ;;  %v3866_v49 = vsel %vm1940_vm2, %v3864_v31, %v3865_v38  ;;  %2468 = vst.msk [vmem:[%s6567_s18 + $0x68] sm:$0xff] %vm2460_vm4, %v2379_v47  ;;  %v2377_v50 = vpop.permute.xlu0 %2376 }
 0x22d   : > { %v3991_v51 = vadd.f32 %v6997_v52, %v3959_v44  ;;  %v3960_v53 = vadd.f32 %v5569_v36, %v3866_v49  ;;  %v3863_v8 = vsel %vm1940_vm2, %v3861_v33, %v3862_v46  ;;  %2467 = vst.msk [vmem:[%s6567_s18 + $0x60] sm:$0xff] %vm2460_vm4, %v2377_v50 }
 0x22e   : > { %v3989_v54 = vadd.f32 %v6997_v52, %v3957_v48  ;;  %v3958_v55 = vadd.f32 %v3863_v8, %v3041_v40  ;;  %v5572_v56 = vpop.f32.mrb[68].mxu1  ;;  %v5504_v57 = vpop.f32.mrb[68].mxu0 }
 0x22f   : > { %4849 = vst.msk [vmem:[%s6567_s18 + $0x30] sm:$0xff] %vm526_vm1, %v3991_v51  ;;  %v3992_v58 = vadd.f32 %v6997_v52, %v3960_v53  ;;  %v2375_v21 = vpop.permute.xlu1 %2374  ;;  %v3870_v22 = vrot.slane %v5504_v57, 7  ;;  %v3054_v11 = vpop.f32.mrb[69].mxu1 }
 0x230   : > { %4847 = vst.msk [vmem:[%s6567_s18 + $0x10] sm:$0xff] %vm526_vm1, %v3989_v54  ;;  %v3990_v13 = vadd.f32 %v6997_v52, %v3958_v55  ;;  %v2373_v23 = vpop.permute.xlu0 %2372  ;;  %v2722_v27 = vpop.f32.mrb[69].mxu0 }
 0x231   : > { %2466 = vst.msk [vmem:[%s6567_s18 + $0x48] sm:$0xff] %vm2460_vm4, %v2375_v21  ;;  %v3944_v24 = vsel %vm1940_vm2, 0.0, %v3870_v22  ;;  %2465 = vst.msk [vmem:[%s6567_s18 + $0x40] sm:$0xff] %vm2460_vm4, %v2373_v23  ;;  %v3867_v25 = vrot.slane %v2722_v27, 7  ;;  %v5505_v15 = vpop.f32.mrb[70].mxu0  ;;  %v5573_v42 = vpop.f32.mrb[70].mxu1 }
 0x232   : > { %4850 = vst.msk [vmem:[%s6567_s18 + $0x38] sm:$0xff] %vm526_vm1, %v3992_v58  ;;  %4848 = vst.msk [vmem:[%s6567_s18 + $0x18] sm:$0xff] %vm526_vm1, %v3990_v13  ;;  %v3963_v59 = vadd.f32 %v5572_v56, %v3944_v24  ;;  %v3871_v60 = vrot.slane %v5505_v15, 7  ;;  %v2725_v61 = vpop.f32.mrb[71].mxu0  ;;  %v3057_v16 = vpop.f32.mrb[71].mxu1 }
 0x233   : > { %v3943_v17 = vsel %vm1940_vm2, 0.0, %v3867_v25  ;;  %v3868_v62 = vrot.slane %v2725_v61, 7  ;;  %v2387_v63 = vpop.permute.xlu1 %2386 }
 0x234   : > { %v3995_v0 = vadd.f32 %v6997_v52, %v3963_v59  ;;  %v3961_v1 = vadd.f32 %v3943_v17, %v3054_v11  ;;  %v3872_v2 = vsel %vm1940_vm2, %v3870_v22, %v3871_v60  ;;  %2472 = vst.msk [vmem:[%s6567_s18 + $0xa8] sm:$0xff] %vm2460_vm4, %v2387_v63  ;;  %v2385_v3 = vpop.permute.xlu0 %2384 }
 0x235   : > { %v3964_v4 = vadd.f32 %v5573_v42, %v3872_v2  ;;  %v3869_v5 = vsel %vm1940_vm2, %v3867_v25, %v3868_v62  ;;  %2471 = vst.msk [vmem:[%s6567_s18 + $0xa0] sm:$0xff] %vm2460_vm4, %v2385_v3 }
 0x236   : > { %4853 = vst.msk [vmem:[%s6567_s18 + $0x70] sm:$0xff] %vm526_vm1, %v3995_v0  ;;  %v3993_v18 = vadd.f32 %v6997_v52, %v3961_v1  ;;  %v3962_v7 = vadd.f32 %v3869_v5, %v3057_v16  ;;  %v5576_v9 = vpop.f32.mrb[72].mxu1  ;;  %v5508_v10 = vpop.f32.mrb[72].mxu0 }
 0x237   : > { %v3996_v12 = vadd.f32 %v6997_v52, %v3964_v4  ;;  %v2383_v26 = vpop.permute.xlu1 %2382  ;;  %v3876_v29 = vrot.slane %v5508_v10, 7  ;;  %v3070_v20 = vpop.f32.mrb[73].mxu1 }
 0x238   : > { %4851 = vst.msk [vmem:[%s6567_s18 + $0x50] sm:$0xff] %vm526_vm1, %v3993_v18  ;;  %v3994_v30 = vadd.f32 %v6997_v52, %v3962_v7  ;;  %v2381_v35 = vpop.permute.xlu0 %2380  ;;  %v2738_v41 = vpop.f32.mrb[73].mxu0 }
 0x239   : > { %2470 = vst.msk [vmem:[%s6567_s18 + $0x88] sm:$0xff] %vm2460_vm4, %v2383_v26  ;;  %v3946_v14 = vsel %vm1940_vm2, 0.0, %v3876_v29  ;;  %2469 = vst.msk [vmem:[%s6567_s18 + $0x80] sm:$0xff] %vm2460_vm4, %v2381_v35  ;;  %v3873_v43 = vrot.slane %v2738_v41, 7  ;;  %v5509_v19 = vpop.f32.mrb[74].mxu0  ;;  %v5577_v28 = vpop.f32.mrb[74].mxu1 }
 0x23a   : > { %4854 = vst.msk [vmem:[%s6567_s18 + $0x78] sm:$0xff] %vm526_vm1, %v3996_v12  ;;  %4852 = vst.msk [vmem:[%s6567_s18 + $0x58] sm:$0xff] %vm526_vm1, %v3994_v30  ;;  %v3967_v31 = vadd.f32 %v5576_v9, %v3946_v14  ;;  %v3877_v32 = vrot.slane %v5509_v19, 7  ;;  %v2741_v34 = vpop.f32.mrb[75].mxu0  ;;  %v3073_v33 = vpop.f32.mrb[75].mxu1 }
 0x23b   : > { %v3945_v6 = vsel %vm1940_vm2, 0.0, %v3873_v43  ;;  %v3874_v36 = vrot.slane %v2741_v34, 7  ;;  %v2395_v37 = vpop.permute.xlu1 %2394 }
 0x23c   : > { %v3999_v38 = vadd.f32 %v6997_v52, %v3967_v31  ;;  %v3965_v39 = vadd.f32 %v3945_v6, %v3070_v20  ;;  %v3878_v40 = vsel %vm1940_vm2, %v3876_v29, %v3877_v32  ;;  %2476 = vst.msk [vmem:[%s6567_s18 + $0xe8] sm:$0xff] %vm2460_vm4, %v2395_v37  ;;  %v2393_v44 = vpop.permute.xlu0 %2392 }
 0x23d   : > { %v3968_v45 = vadd.f32 %v5577_v28, %v3878_v40  ;;  %v3875_v46 = vsel %vm1940_vm2, %v3873_v43, %v3874_v36  ;;  %2475 = vst.msk [vmem:[%s6567_s18 + $0xe0] sm:$0xff] %vm2460_vm4, %v2393_v44 }
 0x23e   : > { %4857 = vst.msk [vmem:[%s6567_s18 + $0xb0] sm:$0xff] %vm526_vm1, %v3999_v38  ;;  %v3997_v47 = vadd.f32 %v6997_v52, %v3965_v39  ;;  %v3966_v48 = vadd.f32 %v3875_v46, %v3073_v33  ;;  %v5580_v49 = vpop.f32.mrb[76].mxu1  ;;  %v5512_v50 = vpop.f32.mrb[76].mxu0 }
 0x23f   : > { %v4000_v51 = vadd.f32 %v6997_v52, %v3968_v45  ;;  %v2391_v53 = vpop.permute.xlu1 %2390  ;;  %v3882_v8 = vrot.slane %v5512_v50, 7  ;;  %v3086_v54 = vpop.f32.mrb[77].mxu1 }
 0x240   : > { %4855 = vst.msk [vmem:[%s6567_s18 + $0x90] sm:$0xff] %vm526_vm1, %v3997_v47  ;;  %v3998_v55 = vadd.f32 %v6997_v52, %v3966_v48  ;;  %v2389_v56 = vpop.permute.xlu0 %2388  ;;  %v2754_v57 = vpop.f32.mrb[77].mxu0 }
 0x241   : > { %2474 = vst.msk [vmem:[%s6567_s18 + $0xc8] sm:$0xff] %vm2460_vm4, %v2391_v53  ;;  %v3948_v58 = vsel %vm1940_vm2, 0.0, %v3882_v8  ;;  %2473 = vst.msk [vmem:[%s6567_s18 + $0xc0] sm:$0xff] %vm2460_vm4, %v2389_v56  ;;  %v3879_v21 = vrot.slane %v2754_v57, 7  ;;  %v5513_v22 = vpop.f32.mrb[78].mxu0  ;;  %v5581_v11 = vpop.f32.mrb[78].mxu1 }
 0x242   : > { %4858 = vst.msk [vmem:[%s6567_s18 + $0xb8] sm:$0xff] %vm526_vm1, %v4000_v51  ;;  %4856 = vst.msk [vmem:[%s6567_s18 + $0x98] sm:$0xff] %vm526_vm1, %v3998_v55  ;;  %v3971_v13 = vadd.f32 %v5580_v49, %v3948_v58  ;;  %v3883_v23 = vrot.slane %v5513_v22, 7  ;;  %v2757_v27 = vpop.f32.mrb[79].mxu0  ;;  %v3089_v24 = vpop.f32.mrb[79].mxu1 }
 0x243   : > { %v3947_v25 = vsel %vm1940_vm2, 0.0, %v3879_v21  ;;  %v3880_v15 = vrot.slane %v2757_v27, 7  ;;  %v2403_v42 = vpop.permute.xlu1 %2402 }
 0x244   : > { %v4003_v59 = vadd.f32 %v6997_v52, %v3971_v13  ;;  %v3969_v60 = vadd.f32 %v3947_v25, %v3086_v54  ;;  %v3884_v61 = vsel %vm1940_vm2, %v3882_v8, %v3883_v23  ;;  %2480 = vst.msk [vmem:[%s6567_s18 + $0x128] sm:$0xff] %vm2460_vm4, %v2403_v42  ;;  %v2401_v16 = vpop.permute.xlu0 %2400 }
 0x245   : > { %v3972_v17 = vadd.f32 %v5581_v11, %v3884_v61  ;;  %v3881_v62 = vsel %vm1940_vm2, %v3879_v21, %v3880_v15  ;;  %2479 = vst.msk [vmem:[%s6567_s18 + $0x120] sm:$0xff] %vm2460_vm4, %v2401_v16 }
 0x246   : > { %4861 = vst.msk [vmem:[%s6567_s18 + $0xf0] sm:$0xff] %vm526_vm1, %v4003_v59  ;;  %v4001_v63 = vadd.f32 %v6997_v52, %v3969_v60  ;;  %v3970_v0 = vadd.f32 %v3881_v62, %v3089_v24  ;;  %v5584_v1 = vpop.f32.mrb[80].mxu1  ;;  %v5516_v2 = vpop.f32.mrb[80].mxu0 }
 0x247   : > { %v4004_v3 = vadd.f32 %v6997_v52, %v3972_v17  ;;  %v2399_v4 = vpop.permute.xlu1 %2398  ;;  %v3888_v5 = vrot.slane %v5516_v2, 7  ;;  %v3102_v18 = vpop.f32.mrb[81].mxu1 }
 0x248   : > { %4859 = vst.msk [vmem:[%s6567_s18 + $0xd0] sm:$0xff] %vm526_vm1, %v4001_v63  ;;  %v4002_v7 = vadd.f32 %v6997_v52, %v3970_v0  ;;  %v2397_v9 = vpop.permute.xlu0 %2396  ;;  %v2770_v10 = vpop.f32.mrb[81].mxu0 }
 0x249   : > { %2478 = vst.msk [vmem:[%s6567_s18 + $0x108] sm:$0xff] %vm2460_vm4, %v2399_v4  ;;  %v3950_v12 = vsel %vm1940_vm2, 0.0, %v3888_v5  ;;  %2477 = vst.msk [vmem:[%s6567_s18 + $0x100] sm:$0xff] %vm2460_vm4, %v2397_v9  ;;  %v3885_v26 = vrot.slane %v2770_v10, 7  ;;  %v5517_v29 = vpop.f32.mrb[82].mxu0  ;;  %v5585_v20 = vpop.f32.mrb[82].mxu1 }
 0x24a   : > { %4862 = vst.msk [vmem:[%s6567_s18 + $0xf8] sm:$0xff] %vm526_vm1, %v4004_v3  ;;  %4860 = vst.msk [vmem:[%s6567_s18 + $0xd8] sm:$0xff] %vm526_vm1, %v4002_v7  ;;  %v3975_v30 = vadd.f32 %v5584_v1, %v3950_v12  ;;  %v3889_v35 = vrot.slane %v5517_v29, 7  ;;  %v2773_v41 = vpop.f32.mrb[83].mxu0  ;;  %v3105_v14 = vpop.f32.mrb[83].mxu1 }
 0x24b   : > { %v3949_v43 = vsel %vm1940_vm2, 0.0, %v3885_v26  ;;  %v3886_v19 = vrot.slane %v2773_v41, 7  ;;  %v2411_v28 = vpop.permute.xlu1 %2410 }
 0x24c   : > { %v4007_v31 = vadd.f32 %v6997_v52, %v3975_v30  ;;  %v3973_v32 = vadd.f32 %v3949_v43, %v3102_v18  ;;  %v3890_v34 = vsel %vm1940_vm2, %v3888_v5, %v3889_v35  ;;  %2484 = vst.msk [vmem:[%s6567_s18 + $0x168] sm:$0xff] %vm2460_vm4, %v2411_v28  ;;  %v2409_v33 = vpop.permute.xlu0 %2408 }
 0x24d   : > { %v3976_v6 = vadd.f32 %v5585_v20, %v3890_v34  ;;  %v3887_v36 = vsel %vm1940_vm2, %v3885_v26, %v3886_v19  ;;  %2483 = vst.msk [vmem:[%s6567_s18 + $0x160] sm:$0xff] %vm2460_vm4, %v2409_v33 }
 0x24e   : > { %4865 = vst.msk [vmem:[%s6567_s18 + $0x130] sm:$0xff] %vm526_vm1, %v4007_v31  ;;  %v4005_v37 = vadd.f32 %v6997_v52, %v3973_v32  ;;  %v3974_v38 = vadd.f32 %v3887_v36, %v3105_v14  ;;  %v5588_v39 = vpop.f32.mrb[84].mxu1  ;;  %v5520_v40 = vpop.f32.mrb[84].mxu0 }
 0x24f   : > { %v4008_v44 = vadd.f32 %v6997_v52, %v3976_v6  ;;  %v2407_v45 = vpop.permute.xlu1 %2406  ;;  %v3894_v46 = vrot.slane %v5520_v40, 7  ;;  %v3118_v47 = vpop.f32.mrb[85].mxu1 }
 0x250   : > { %4863 = vst.msk [vmem:[%s6567_s18 + $0x110] sm:$0xff] %vm526_vm1, %v4005_v37  ;;  %v4006_v48 = vadd.f32 %v6997_v52, %v3974_v38  ;;  %v2405_v49 = vpop.permute.xlu0 %2404  ;;  %v2786_v50 = vpop.f32.mrb[85].mxu0 }
 0x251   : > { %2482 = vst.msk [vmem:[%s6567_s18 + $0x148] sm:$0xff] %vm2460_vm4, %v2407_v45  ;;  %v3952_v51 = vsel %vm1940_vm2, 0.0, %v3894_v46  ;;  %2481 = vst.msk [vmem:[%s6567_s18 + $0x140] sm:$0xff] %vm2460_vm4, %v2405_v49  ;;  %v3891_v53 = vrot.slane %v2786_v50, 7  ;;  %v5521_v8 = vpop.f32.mrb[86].mxu0  ;;  %v5589_v54 = vpop.f32.mrb[86].mxu1 }
 0x252   : > { %4866 = vst.msk [vmem:[%s6567_s18 + $0x138] sm:$0xff] %vm526_vm1, %v4008_v44  ;;  %4864 = vst.msk [vmem:[%s6567_s18 + $0x118] sm:$0xff] %vm526_vm1, %v4006_v48  ;;  %v3979_v55 = vadd.f32 %v5588_v39, %v3952_v51  ;;  %v3895_v56 = vrot.slane %v5521_v8, 7  ;;  %v2789_v57 = vpop.f32.mrb[87].mxu0  ;;  %v3121_v58 = vpop.f32.mrb[87].mxu1 }
 0x253   : > { %v3951_v21 = vsel %vm1940_vm2, 0.0, %v3891_v53  ;;  %v3892_v22 = vrot.slane %v2789_v57, 7  ;;  %v2419_v11 = vpop.permute.xlu1 %2418 }
 0x254   : > { %v4011_v13 = vadd.f32 %v6997_v52, %v3979_v55  ;;  %v3977_v23 = vadd.f32 %v3951_v21, %v3118_v47  ;;  %v3896_v27 = vsel %vm1940_vm2, %v3894_v46, %v3895_v56  ;;  %2488 = vst.msk [vmem:[%s6567_s18 + $0x1a8] sm:$0xff] %vm2460_vm4, %v2419_v11  ;;  %v2417_v24 = vpop.permute.xlu0 %2416 }
 0x255   : > { %v3980_v25 = vadd.f32 %v5589_v54, %v3896_v27  ;;  %v3893_v15 = vsel %vm1940_vm2, %v3891_v53, %v3892_v22  ;;  %2487 = vst.msk [vmem:[%s6567_s18 + $0x1a0] sm:$0xff] %vm2460_vm4, %v2417_v24 }
 0x256   : > { %4869 = vst.msk [vmem:[%s6567_s18 + $0x170] sm:$0xff] %vm526_vm1, %v4011_v13  ;;  %v4009_v42 = vadd.f32 %v6997_v52, %v3977_v23  ;;  %v3978_v59 = vadd.f32 %v3893_v15, %v3121_v58  ;;  %v5592_v60 = vpop.f32.mrb[88].mxu1  ;;  %v5524_v61 = vpop.f32.mrb[88].mxu0 }
 0x257   : > { %v4012_v16 = vadd.f32 %v6997_v52, %v3980_v25  ;;  %v2415_v17 = vpop.permute.xlu1 %2414  ;;  %v3900_v62 = vrot.slane %v5524_v61, 7  ;;  %v3134_v63 = vpop.f32.mrb[89].mxu1 }
 0x258   : > { %4867 = vst.msk [vmem:[%s6567_s18 + $0x150] sm:$0xff] %vm526_vm1, %v4009_v42  ;;  %v4010_v0 = vadd.f32 %v6997_v52, %v3978_v59  ;;  %v2413_v1 = vpop.permute.xlu0 %2412  ;;  %v2802_v2 = vpop.f32.mrb[89].mxu0 }
 0x259   : > { %2486 = vst.msk [vmem:[%s6567_s18 + $0x188] sm:$0xff] %vm2460_vm4, %v2415_v17  ;;  %v3954_v3 = vsel %vm1940_vm2, 0.0, %v3900_v62  ;;  %2485 = vst.msk [vmem:[%s6567_s18 + $0x180] sm:$0xff] %vm2460_vm4, %v2413_v1  ;;  %v3897_v4 = vrot.slane %v2802_v2, 7  ;;  %v5525_v5 = vpop.f32.mrb[90].mxu0  ;;  %v5593_v18 = vpop.f32.mrb[90].mxu1 }
 0x25a   : > { %4870 = vst.msk [vmem:[%s6567_s18 + $0x178] sm:$0xff] %vm526_vm1, %v4012_v16  ;;  %4868 = vst.msk [vmem:[%s6567_s18 + $0x158] sm:$0xff] %vm526_vm1, %v4010_v0  ;;  %v3983_v7 = vadd.f32 %v5592_v60, %v3954_v3  ;;  %v3901_v9 = vrot.slane %v5525_v5, 7  ;;  %v2805_v10 = vpop.f32.mrb[91].mxu0  ;;  %v3137_v12 = vpop.f32.mrb[91].mxu1 }
 0x25b   : > { %v3953_v26 = vsel %vm1940_vm2, 0.0, %v3897_v4  ;;  %v3898_v29 = vrot.slane %v2805_v10, 7  ;;  %v2427_v20 = vpop.permute.xlu1 %2426 }
 0x25c   : > { %v4015_v30 = vadd.f32 %v6997_v52, %v3983_v7  ;;  %v3981_v35 = vadd.f32 %v3953_v26, %v3134_v63  ;;  %v3902_v41 = vsel %vm1940_vm2, %v3900_v62, %v3901_v9  ;;  %2492 = vst.msk [vmem:[%s6567_s18 + $0x1e8] sm:$0xff] %vm2460_vm4, %v2427_v20  ;;  %v2425_v14 = vpop.permute.xlu0 %2424 }
 0x25d   : > { %v3984_v43 = vadd.f32 %v5593_v18, %v3902_v41  ;;  %v3899_v19 = vsel %vm1940_vm2, %v3897_v4, %v3898_v29  ;;  %2491 = vst.msk [vmem:[%s6567_s18 + $0x1e0] sm:$0xff] %vm2460_vm4, %v2425_v14 }
 0x25e   : > { %4873 = vst.msk [vmem:[%s6567_s18 + $0x1b0] sm:$0xff] %vm526_vm1, %v4015_v30  ;;  %v4013_v28 = vadd.f32 %v6997_v52, %v3981_v35  ;;  %v3982_v31 = vadd.f32 %v3899_v19, %v3137_v12  ;;  %v5528_v32 = vpop.f32.mrb[92].mxu0  ;;  %v5596_v34 = vpop.f32.mrb[92].mxu1 }
 0x25f   : > { %v4016_v33 = vadd.f32 %v6997_v52, %v3984_v43  ;;  %v3906_v6 = vrot.slane %v5528_v32, 7  ;;  %v2423_v36 = vpop.permute.xlu1 %2422  ;;  %v3150_v37 = vpop.f32.mrb[93].mxu1 }
 0x260   : > { %4871 = vst.msk [vmem:[%s6567_s18 + $0x190] sm:$0xff] %vm526_vm1, %v4013_v28  ;;  %v4014_v38 = vadd.f32 %v6997_v52, %v3982_v31  ;;  %v2421_v39 = vpop.permute.xlu0 %2420  ;;  %v2818_v40 = vpop.f32.mrb[93].mxu0 }
 0x261   : > { %2490 = vst.msk [vmem:[%s6567_s18 + $0x1c8] sm:$0xff] %vm2460_vm4, %v2423_v36  ;;  %v3956_v44 = vsel %vm1940_vm2, 0.0, %v3906_v6  ;;  %2489 = vst.msk [vmem:[%s6567_s18 + $0x1c0] sm:$0xff] %vm2460_vm4, %v2421_v39  ;;  %v3903_v45 = vrot.slane %v2818_v40, 7  ;;  %v5529_v46 = vpop.f32.mrb[94].mxu0  ;;  %v5597_v47 = vpop.f32.mrb[94].mxu1 }
 0x262   : > { %4874 = vst.msk [vmem:[%s6567_s18 + $0x1b8] sm:$0xff] %vm526_vm1, %v4016_v33  ;;  %4872 = vst.msk [vmem:[%s6567_s18 + $0x198] sm:$0xff] %vm526_vm1, %v4014_v38  ;;  %v3987_v48 = vadd.f32 %v5596_v34, %v3956_v44  ;;  %v3907_v49 = vrot.slane %v5529_v46, 7  ;;  %v2821_v50 = vpop.f32.mrb[95].mxu0  ;;  %v3153_v51 = vpop.f32.mrb[95].mxu1 }
 0x263   : > { %v3955_v53 = vsel %vm1940_vm2, 0.0, %v3903_v45  ;;  %v3904_v8 = vrot.slane %v2821_v50, 7 }
 0x264   : > { %v4019_v54 = vadd.f32 %v6997_v52, %v3987_v48  ;;  %v3985_v55 = vadd.f32 %v3955_v53, %v3150_v37  ;;  %v3908_v56 = vsel %vm1940_vm2, %v3906_v6, %v3907_v49 }
 0x265   : > { %v3988_v57 = vadd.f32 %v5597_v47, %v3908_v56  ;;  %v3905_v58 = vsel %vm1940_vm2, %v3903_v45, %v3904_v8 }
 0x266   : > { %4877 = vst.msk [vmem:[%s6567_s18 + $0x1f0] sm:$0xff] %vm526_vm1, %v4019_v54  ;;  %v4017_v21 = vadd.f32 %v6997_v52, %v3985_v55  ;;  %v3986_v22 = vadd.f32 %v3905_v58, %v3153_v51 }
 0x267   : > { %v4020_v11 = vadd.f32 %v6997_v52, %v3988_v57 }
 0x268   : > { %4875 = vst.msk [vmem:[%s6567_s18 + $0x1d0] sm:$0xff] %vm526_vm1, %v4017_v21  ;;  %v4018_v13 = vadd.f32 %v6997_v52, %v3986_v22 }
 0x269   : > { %4878 = vst.msk [vmem:[%s6567_s18 + $0x1f8] sm:$0xff] %vm526_vm1, %v4020_v11 }
 0x26a   : > { %4876 = vst.msk [vmem:[%s6567_s18 + $0x1d8] sm:$0xff] %vm526_vm1, %v4018_v13 }
 0x2a6   : > { %v5636_v23 = vpop.f32.mrb[96].mxu0  ;;  %v5704_v27 = vpop.f32.mrb[96].mxu1 }
 0x2a7   : > { %v3370_v24 = vpop.f32.mrb[97].mxu0  ;;  %v3702_v25 = vpop.f32.mrb[97].mxu1  ;;  %v4056_v59 = vrot.slane %v5704_v27, 1 }
 0x2a8   : > { %v5637_v15 = vpop.f32.mrb[98].mxu0  ;;  %v5705_v42 = vpop.f32.mrb[98].mxu1  ;;  %v4053_v17 = vrot.slane %v3702_v25, 1 }
 0x2a9   : > { %v4057_v60 = vrot.slane %v5705_v42, 1  ;;  %v3373_v61 = vpop.f32.mrb[99].mxu0  ;;  %v3705_v16 = vpop.f32.mrb[99].mxu1 }
 0x2aa   : > { %v4054_v62 = vrot.slane %v3705_v16, 1 }
 0x2ab   : > { %v4058_v63 = vsel %vm2139_vm3, %v4056_v59, %v4057_v60  ;;  %v4134_v0 = vsel %vm2139_vm3, %v4057_v60, 0.0 }
 0x2ac   : > { %v4152_v1 = vadd.f32 %v5637_v15, %v4134_v0  ;;  %v4055_v2 = vsel %vm2139_vm3, %v4053_v17, %v4054_v62  ;;  %v4133_v3 = vsel %vm2139_vm3, %v4054_v62, 0.0  ;;  %v4151_v4 = vadd.f32 %v5636_v23, %v4058_v63 }
 0x2ad   : > { %v4150_v5 = vadd.f32 %v4133_v3, %v3373_v61  ;;  %v4149_v18 = vadd.f32 %v4055_v2, %v3370_v24 }
 0x2ae   : > { %v5640_v7 = vpop.f32.mrb[100].mxu0  ;;  %v5708_v9 = vpop.f32.mrb[100].mxu1  ;;  %v4183_v10 = vadd.f32 %v6997_v52, %v4151_v4  ;;  %v4184_v12 = vadd.f32 %v6997_v52, %v4152_v1 }
 0x2af   : > { %v3386_v26 = vpop.f32.mrb[101].mxu0  ;;  %v3718_v29 = vpop.f32.mrb[101].mxu1  ;;  %v4062_v35 = vrot.slane %v5708_v9, 1  ;;  %v4181_v31 = vadd.f32 %v6997_v52, %v4149_v18  ;;  %v4182_v32 = vadd.f32 %v6997_v52, %v4150_v5 }
 0x2b0   : > { %v5709_v20 = vpop.f32.mrb[102].mxu1  ;;  %4282 = vrot.lane.b32.xlu0 %v4183_v10, %s6091_s14  ;;  %v5641_v30 = vpop.f32.mrb[102].mxu0  ;;  %4284 = vrot.lane.b32.xlu1 %v4184_v12, %s6091_s14  ;;  %v4059_v19 = vrot.slane %v3718_v29, 1 }
 0x2b1   : > { %v4063_v41 = vrot.slane %v5709_v20, 1  ;;  %v3389_v14 = vpop.f32.mrb[103].mxu0  ;;  %v3721_v43 = vpop.f32.mrb[103].mxu1 }
 0x2b2   : > { %v4060_v28 = vrot.slane %v3721_v43, 1 }
 0x2b3   : > { %v4064_v34 = vsel %vm2139_vm3, %v4062_v35, %v4063_v41  ;;  %v4136_v33 = vsel %vm2139_vm3, %v4063_v41, 0.0 }
 0x2b4   : > { %v4156_v6 = vadd.f32 %v5641_v30, %v4136_v33  ;;  %v4061_v36 = vsel %vm2139_vm3, %v4059_v19, %v4060_v28  ;;  %v4135_v37 = vsel %vm2139_vm3, %v4060_v28, 0.0  ;;  %4278 = vrot.lane.b32.xlu0 %v4181_v31, %s6091_s14  ;;  %4280 = vrot.lane.b32.xlu1 %v4182_v32, %s6091_s14  ;;  %v4155_v38 = vadd.f32 %v5640_v7, %v4064_v34 }
 0x2b5   : > { %v4154_v39 = vadd.f32 %v4135_v37, %v3389_v14  ;;  %v4153_v40 = vadd.f32 %v4061_v36, %v3386_v26 }
 0x2b6   : > { %v4188_v44 = vadd.f32 %v6997_v52, %v4156_v6  ;;  %v5644_v45 = vpop.f32.mrb[104].mxu0  ;;  %v5712_v46 = vpop.f32.mrb[104].mxu1  ;;  %v4187_v47 = vadd.f32 %v6997_v52, %v4155_v38 }
 0x2b7   : > { %v3402_v48 = vpop.f32.mrb[105].mxu0  ;;  %v3734_v49 = vpop.f32.mrb[105].mxu1  ;;  %v4068_v53 = vrot.slane %v5712_v46, 1  ;;  %v4185_v58 = vadd.f32 %v6997_v52, %v4153_v40  ;;  %v4186_v21 = vadd.f32 %v6997_v52, %v4154_v39 }
 0x2b8   : > { %v5713_v50 = vpop.f32.mrb[106].mxu1  ;;  %4290 = vrot.lane.b32.xlu0 %v4187_v47, %s6091_s14  ;;  %v5645_v51 = vpop.f32.mrb[106].mxu0  ;;  %4292 = vrot.lane.b32.xlu1 %v4188_v44, %s6091_s14  ;;  %v4065_v56 = vrot.slane %v3734_v49, 1 }
 0x2b9   : > { %v4069_v8 = vrot.slane %v5713_v50, 1  ;;  %v3405_v54 = vpop.f32.mrb[107].mxu0  ;;  %v3737_v55 = vpop.f32.mrb[107].mxu1 }
 0x2ba   : > { %v4066_v57 = vrot.slane %v3737_v55, 1 }
 0x2bb   : > { %v4070_v22 = vsel %vm2139_vm3, %v4068_v53, %v4069_v8  ;;  %v4138_v11 = vsel %vm2139_vm3, %v4069_v8, 0.0 }
 0x2bc   : > { %v4160_v13 = vadd.f32 %v5645_v51, %v4138_v11  ;;  %v4067_v23 = vsel %vm2139_vm3, %v4065_v56, %v4066_v57  ;;  %v4137_v27 = vsel %vm2139_vm3, %v4066_v57, 0.0  ;;  %4286 = vrot.lane.b32.xlu0 %v4185_v58, %s6091_s14  ;;  %4288 = vrot.lane.b32.xlu1 %v4186_v21, %s6091_s14  ;;  %v4159_v24 = vadd.f32 %v5644_v45, %v4070_v22 }
 0x2bd   : > { %v4158_v25 = vadd.f32 %v4137_v27, %v3405_v54  ;;  %v4157_v15 = vadd.f32 %v4067_v23, %v3402_v48 }
 0x2be   : > { %v4192_v42 = vadd.f32 %v6997_v52, %v4160_v13  ;;  %v5648_v59 = vpop.f32.mrb[108].mxu0  ;;  %v5716_v60 = vpop.f32.mrb[108].mxu1  ;;  %v4191_v61 = vadd.f32 %v6997_v52, %v4159_v24 }
 0x2bf   : > { %v3418_v16 = vpop.f32.mrb[109].mxu0  ;;  %v3750_v17 = vpop.f32.mrb[109].mxu1  ;;  %v4074_v0 = vrot.slane %v5716_v60, 1  ;;  %v4189_v18 = vadd.f32 %v6997_v52, %v4157_v15  ;;  %v4190_v7 = vadd.f32 %v6997_v52, %v4158_v25 }
 0x2c0   : > { %v5717_v62 = vpop.f32.mrb[110].mxu1  ;;  %4298 = vrot.lane.b32.xlu0 %v4191_v61, %s6091_s14  ;;  %v5649_v63 = vpop.f32.mrb[110].mxu0  ;;  %4300 = vrot.lane.b32.xlu1 %v4192_v42, %s6091_s14  ;;  %v4071_v4 = vrot.slane %v3750_v17, 1 }
 0x2c1   : > { %v4075_v1 = vrot.slane %v5717_v62, 1  ;;  %v3421_v2 = vpop.f32.mrb[111].mxu0  ;;  %v3753_v3 = vpop.f32.mrb[111].mxu1 }
 0x2c2   : > { %v4072_v5 = vrot.slane %v3753_v3, 1 }
 0x2c3   : > { %v4076_v9 = vsel %vm2139_vm3, %v4074_v0, %v4075_v1  ;;  %v4140_v10 = vsel %vm2139_vm3, %v4075_v1, 0.0 }
 0x2c4   : > { %v4164_v12 = vadd.f32 %v5649_v63, %v4140_v10  ;;  %v4073_v26 = vsel %vm2139_vm3, %v4071_v4, %v4072_v5  ;;  %v4139_v29 = vsel %vm2139_vm3, %v4072_v5, 0.0  ;;  %4294 = vrot.lane.b32.xlu0 %v4189_v18, %s6091_s14  ;;  %4296 = vrot.lane.b32.xlu1 %v4190_v7, %s6091_s14  ;;  %v4163_v20 = vadd.f32 %v5648_v59, %v4076_v9 }
 0x2c5   : > { %v4162_v30 = vadd.f32 %v4139_v29, %v3421_v2  ;;  %v4161_v35 = vadd.f32 %v4073_v26, %v3418_v16 }
 0x2c6   : > { %v4196_v41 = vadd.f32 %v6997_v52, %v4164_v12  ;;  %v5652_v14 = vpop.f32.mrb[112].mxu0  ;;  %v5720_v43 = vpop.f32.mrb[112].mxu1  ;;  %v4195_v19 = vadd.f32 %v6997_v52, %v4163_v20 }
 0x2c7   : > { %v3434_v28 = vpop.f32.mrb[113].mxu0  ;;  %v3766_v31 = vpop.f32.mrb[113].mxu1  ;;  %v4080_v33 = vrot.slane %v5720_v43, 1  ;;  %v4193_v40 = vadd.f32 %v6997_v52, %v4161_v35  ;;  %v4194_v44 = vadd.f32 %v6997_v52, %v4162_v30  ;;  %v6065_v35 = vld [vmem:[%s7416_s4] ss:$0 sm:$0xff] }
 0x2c8   : > { %v5721_v32 = vpop.f32.mrb[114].mxu1  ;;  %4306 = vrot.lane.b32.xlu0 %v4195_v19, %s6091_s14  ;;  %v5653_v34 = vpop.f32.mrb[114].mxu0  ;;  %4308 = vrot.lane.b32.xlu1 %v4196_v41, %s6091_s14  ;;  %v4077_v38 = vrot.slane %v3766_v31, 1 }
 0x2c9   : > { %v4081_v6 = vrot.slane %v5721_v32, 1  ;;  %v3437_v36 = vpop.f32.mrb[115].mxu0  ;;  %v3769_v37 = vpop.f32.mrb[115].mxu1 }
 0x2ca   : > { %v4078_v39 = vrot.slane %v3769_v37, 1 }
 0x2cb   : > { %v4082_v45 = vsel %vm2139_vm3, %v4080_v33, %v4081_v6  ;;  %v4142_v46 = vsel %vm2139_vm3, %v4081_v6, 0.0 }
 0x2cc   : > { %v4168_v47 = vadd.f32 %v5653_v34, %v4142_v46  ;;  %v4079_v48 = vsel %vm2139_vm3, %v4077_v38, %v4078_v39  ;;  %v4141_v49 = vsel %vm2139_vm3, %v4078_v39, 0.0  ;;  %4302 = vrot.lane.b32.xlu0 %v4193_v40, %s6091_s14  ;;  %4304 = vrot.lane.b32.xlu1 %v4194_v44, %s6091_s14  ;;  %v4167_v50 = vadd.f32 %v5652_v14, %v4082_v45 }
 0x2cd   : > { %v4166_v51 = vadd.f32 %v4141_v49, %v3437_v36  ;;  %v4165_v53 = vadd.f32 %v4079_v48, %v3434_v28 }
 0x2ce   : > { %v4200_v8 = vadd.f32 %v6997_v52, %v4168_v47  ;;  %v5656_v54 = vpop.f32.mrb[116].mxu0  ;;  %v5724_v55 = vpop.f32.mrb[116].mxu1  ;;  %v4199_v56 = vadd.f32 %v6997_v52, %v4167_v50 }
 0x2cf   : > { %v3450_v57 = vpop.f32.mrb[117].mxu0  ;;  %v3782_v58 = vpop.f32.mrb[117].mxu1  ;;  %v4086_v11 = vrot.slane %v5724_v55, 1  ;;  %v4197_v15 = vadd.f32 %v6997_v52, %v4165_v53  ;;  %v4198_v42 = vadd.f32 %v6997_v52, %v4166_v51 }
 0x2d0   : > { %v5725_v21 = vpop.f32.mrb[118].mxu1  ;;  %4314 = vrot.lane.b32.xlu0 %v4199_v56, %s6091_s14  ;;  %v5657_v22 = vpop.f32.mrb[118].mxu0  ;;  %4316 = vrot.lane.b32.xlu1 %v4200_v8, %s6091_s14  ;;  %v4083_v24 = vrot.slane %v3782_v58, 1 }
 0x2d1   : > { %v4087_v13 = vrot.slane %v5725_v21, 1  ;;  %v3453_v23 = vpop.f32.mrb[119].mxu0  ;;  %v3785_v27 = vpop.f32.mrb[119].mxu1 }
 0x2d2   : > { %v4084_v25 = vrot.slane %v3785_v27, 1 }
 0x2d3   : > { %v4088_v59 = vsel %vm2139_vm3, %v4086_v11, %v4087_v13  ;;  %v4144_v60 = vsel %vm2139_vm3, %v4087_v13, 0.0 }
 0x2d4   : > { %v4172_v61 = vadd.f32 %v5657_v22, %v4144_v60  ;;  %v4085_v16 = vsel %vm2139_vm3, %v4083_v24, %v4084_v25  ;;  %v4143_v17 = vsel %vm2139_vm3, %v4084_v25, 0.0  ;;  %4310 = vrot.lane.b32.xlu0 %v4197_v15, %s6091_s14  ;;  %4312 = vrot.lane.b32.xlu1 %v4198_v42, %s6091_s14  ;;  %v4171_v62 = vadd.f32 %v5656_v54, %v4088_v59 }
 0x2d5   : > { %v4170_v63 = vadd.f32 %v4143_v17, %v3453_v23  ;;  %v4169_v0 = vadd.f32 %v4085_v16, %v3450_v57 }
 0x2d6   : > { %v4204_v1 = vadd.f32 %v6997_v52, %v4172_v61  ;;  %v5660_v2 = vpop.f32.mrb[120].mxu0  ;;  %v5728_v3 = vpop.f32.mrb[120].mxu1  ;;  %v4203_v4 = vadd.f32 %v6997_v52, %v4171_v62 }
 0x2d7   : > { %v3466_v5 = vpop.f32.mrb[121].mxu0  ;;  %v3798_v18 = vpop.f32.mrb[121].mxu1  ;;  %v4092_v10 = vrot.slane %v5728_v3, 1  ;;  %v4201_v41 = vadd.f32 %v6065_v35, %v4169_v0  ;;  %v4202_v52 = vadd.f32 %v6065_v35, %v4170_v63 }
 0x2d8   : > { %v5729_v7 = vpop.f32.mrb[122].mxu1  ;;  %4322 = vrot.lane.b32.xlu0 %v4203_v4, %s6091_s14  ;;  %v5661_v9 = vpop.f32.mrb[122].mxu0  ;;  %4324 = vrot.lane.b32.xlu1 %v4204_v1, %s6091_s14  ;;  %v4089_v20 = vrot.slane %v3798_v18, 1 }
 0x2d9   : > { %v4093_v12 = vrot.slane %v5729_v7, 1  ;;  %v3469_v26 = vpop.f32.mrb[123].mxu0  ;;  %v3801_v29 = vpop.f32.mrb[123].mxu1 }
 0x2da   : > { %v4090_v30 = vrot.slane %v3801_v29, 1 }
 0x2db   : > { %v4094_v14 = vsel %vm2139_vm3, %v4092_v10, %v4093_v12  ;;  %v4146_v43 = vsel %vm2139_vm3, %v4093_v12, 0.0 }
 0x2dc   : > { %v4176_v19 = vadd.f32 %v5661_v9, %v4146_v43  ;;  %v4091_v28 = vsel %vm2139_vm3, %v4089_v20, %v4090_v30  ;;  %v4145_v31 = vsel %vm2139_vm3, %v4090_v30, 0.0  ;;  %4318 = vrot.lane.b32.xlu0 %v4201_v41, %s6091_s14  ;;  %4320 = vrot.lane.b32.xlu1 %v4202_v52, %s6091_s14  ;;  %v4175_v32 = vadd.f32 %v5660_v2, %v4094_v14 }
 0x2dd   : > { %v4174_v34 = vadd.f32 %v4145_v31, %v3469_v26  ;;  %v4173_v33 = vadd.f32 %v4091_v28, %v3466_v5 }
 0x2de   : > { %v4208_v6 = vadd.f32 %v6065_v35, %v4176_v19  ;;  %v5664_v36 = vpop.f32.mrb[124].mxu0  ;;  %v5732_v37 = vpop.f32.mrb[124].mxu1  ;;  %v4207_v38 = vadd.f32 %v6065_v35, %v4175_v32 }
 0x2df   : > { %v3482_v39 = vpop.f32.mrb[125].mxu0  ;;  %v3814_v40 = vpop.f32.mrb[125].mxu1  ;;  %v4098_v46 = vrot.slane %v5732_v37, 1  ;;  %v4205_v53 = vadd.f32 %v6065_v35, %v4173_v33  ;;  %v4206_v8 = vadd.f32 %v6065_v35, %v4174_v34 }
 0x2e0   : > { %v5733_v44 = vpop.f32.mrb[126].mxu1  ;;  %4330 = vrot.lane.b32.xlu0 %v4207_v38, %s6091_s14  ;;  %v5665_v45 = vpop.f32.mrb[126].mxu0  ;;  %4332 = vrot.lane.b32.xlu1 %v4208_v6, %s6091_s14  ;;  %v4095_v50 = vrot.slane %v3814_v40, 1 }
 0x2e1   : > { %v4099_v47 = vrot.slane %v5733_v44, 1  ;;  %v3485_v48 = vpop.f32.mrb[127].mxu0  ;;  %v3817_v49 = vpop.f32.mrb[127].mxu1 }
 0x2e2   : > { %v4096_v51 = vrot.slane %v3817_v49, 1 }
 0x2e3   : > { %v4100_v54 = vsel %vm2139_vm3, %v4098_v46, %v4099_v47  ;;  %v4148_v55 = vsel %vm2139_vm3, %v4099_v47, 0.0 }
 0x2e4   : > { %v4180_v56 = vadd.f32 %v5665_v45, %v4148_v55  ;;  %v4097_v57 = vsel %vm2139_vm3, %v4095_v50, %v4096_v51  ;;  %v4147_v58 = vsel %vm2139_vm3, %v4096_v51, 0.0  ;;  %4326 = vrot.lane.b32.xlu0 %v4205_v53, %s6091_s14  ;;  %4328 = vrot.lane.b32.xlu1 %v4206_v8, %s6091_s14  ;;  %v4179_v21 = vadd.f32 %v5664_v36, %v4100_v54 }
 0x2e5   : > { %v4177_v22 = vadd.f32 %v4097_v57, %v3482_v39  ;;  %v4178_v11 = vadd.f32 %v4147_v58, %v3485_v48 }
 0x2e6   : > { %v4212_v27 = vadd.f32 %v6065_v35, %v4180_v56  ;;  %v4211_v24 = vadd.f32 %v6065_v35, %v4179_v21 }
 0x2e7   : > { %v4209_v13 = vadd.f32 %v6065_v35, %v4177_v22  ;;  %v4210_v23 = vadd.f32 %v6065_v35, %v4178_v11 }
 0x2e9   : > { %4334 = vrot.lane.b32.xlu0 %v4209_v13, %s6091_s14  ;;  %4336 = vrot.lane.b32.xlu1 %v4210_v23, %s6091_s14 }
 0x2ed   : > { %4338 = vrot.lane.b32.xlu0 %v4211_v24, %s6091_s14  ;;  %4340 = vrot.lane.b32.xlu1 %v4212_v27, %s6091_s14 }
 0x322   : > { %v4283_v25 = vpop.permute.xlu0 %4282  ;;  %v4285_v15 = vpop.permute.xlu1 %4284 }
 0x323   : > { %4881 = vst.msk [vmem:[%s6567_s18 + $0x30] sm:$0xff] %vm2460_vm4, %v4283_v25  ;;  %4882 = vst.msk [vmem:[%s6567_s18 + $0x38] sm:$0xff] %vm2460_vm4, %v4285_v15 }
 0x326   : > { %v4279_v42 = vpop.permute.xlu0 %4278  ;;  %v4281_v59 = vpop.permute.xlu1 %4280 }
 0x327   : > { %4879 = vst.msk [vmem:[%s6567_s18 + $0x10] sm:$0xff] %vm2460_vm4, %v4279_v42  ;;  %4880 = vst.msk [vmem:[%s6567_s18 + $0x18] sm:$0xff] %vm2460_vm4, %v4281_v59 }
 0x32a   : > { %v4291_v60 = vpop.permute.xlu0 %4290  ;;  %v4293_v61 = vpop.permute.xlu1 %4292 }
 0x32b   : > { %4885 = vst.msk [vmem:[%s6567_s18 + $0x70] sm:$0xff] %vm2460_vm4, %v4291_v60  ;;  %4886 = vst.msk [vmem:[%s6567_s18 + $0x78] sm:$0xff] %vm2460_vm4, %v4293_v61 }
 0x32e   : > { %v4287_v16 = vpop.permute.xlu0 %4286  ;;  %v4289_v17 = vpop.permute.xlu1 %4288 }
 0x32f   : > { %4883 = vst.msk [vmem:[%s6567_s18 + $0x50] sm:$0xff] %vm2460_vm4, %v4287_v16  ;;  %4884 = vst.msk [vmem:[%s6567_s18 + $0x58] sm:$0xff] %vm2460_vm4, %v4289_v17 }
 0x332   : > { %v4299_v62 = vpop.permute.xlu0 %4298  ;;  %v4301_v63 = vpop.permute.xlu1 %4300 }
 0x333   : > { %4889 = vst.msk [vmem:[%s6567_s18 + $0xb0] sm:$0xff] %vm2460_vm4, %v4299_v62  ;;  %4890 = vst.msk [vmem:[%s6567_s18 + $0xb8] sm:$0xff] %vm2460_vm4, %v4301_v63 }
 0x336   : > { %v4295_v0 = vpop.permute.xlu0 %4294  ;;  %v4297_v1 = vpop.permute.xlu1 %4296 }
 0x337   : > { %4887 = vst.msk [vmem:[%s6567_s18 + $0x90] sm:$0xff] %vm2460_vm4, %v4295_v0  ;;  %4888 = vst.msk [vmem:[%s6567_s18 + $0x98] sm:$0xff] %vm2460_vm4, %v4297_v1 }
 0x33a   : > { %v4307_v2 = vpop.permute.xlu0 %4306  ;;  %v4309_v3 = vpop.permute.xlu1 %4308 }
 0x33b   : > { %4893 = vst.msk [vmem:[%s6567_s18 + $0xf0] sm:$0xff] %vm2460_vm4, %v4307_v2  ;;  %4894 = vst.msk [vmem:[%s6567_s18 + $0xf8] sm:$0xff] %vm2460_vm4, %v4309_v3 }
 0x33e   : > { %v4303_v4 = vpop.permute.xlu0 %4302  ;;  %v4305_v5 = vpop.permute.xlu1 %4304 }
 0x33f   : > { %4891 = vst.msk [vmem:[%s6567_s18 + $0xd0] sm:$0xff] %vm2460_vm4, %v4303_v4  ;;  %4892 = vst.msk [vmem:[%s6567_s18 + $0xd8] sm:$0xff] %vm2460_vm4, %v4305_v5 }
 0x342   : > { %v4315_v18 = vpop.permute.xlu0 %4314  ;;  %v4317_v7 = vpop.permute.xlu1 %4316 }
 0x343   : > { %4897 = vst.msk [vmem:[%s6567_s18 + $0x130] sm:$0xff] %vm2460_vm4, %v4315_v18  ;;  %4898 = vst.msk [vmem:[%s6567_s18 + $0x138] sm:$0xff] %vm2460_vm4, %v4317_v7 }
 0x346   : > { %v4311_v9 = vpop.permute.xlu0 %4310  ;;  %v4313_v10 = vpop.permute.xlu1 %4312 }
 0x347   : > { %4895 = vst.msk [vmem:[%s6567_s18 + $0x110] sm:$0xff] %vm2460_vm4, %v4311_v9  ;;  %4896 = vst.msk [vmem:[%s6567_s18 + $0x118] sm:$0xff] %vm2460_vm4, %v4313_v10 }
 0x34a   : > { %v4323_v12 = vpop.permute.xlu0 %4322  ;;  %v4325_v26 = vpop.permute.xlu1 %4324 }
 0x34b   : > { %4901 = vst.msk [vmem:[%s6567_s18 + $0x170] sm:$0xff] %vm2460_vm4, %v4323_v12  ;;  %4902 = vst.msk [vmem:[%s6567_s18 + $0x178] sm:$0xff] %vm2460_vm4, %v4325_v26 }
 0x34e   : > { %v4319_v29 = vpop.permute.xlu0 %4318  ;;  %v4321_v20 = vpop.permute.xlu1 %4320 }
 0x34f   : > { %4899 = vst.msk [vmem:[%s6567_s18 + $0x150] sm:$0xff] %vm2460_vm4, %v4319_v29  ;;  %4900 = vst.msk [vmem:[%s6567_s18 + $0x158] sm:$0xff] %vm2460_vm4, %v4321_v20 }
 0x352   : > { %v4331_v30 = vpop.permute.xlu0 %4330  ;;  %v4333_v35 = vpop.permute.xlu1 %4332 }
 0x353   : > { %4905 = vst.msk [vmem:[%s6567_s18 + $0x1b0] sm:$0xff] %vm2460_vm4, %v4331_v30  ;;  %4906 = vst.msk [vmem:[%s6567_s18 + $0x1b8] sm:$0xff] %vm2460_vm4, %v4333_v35 }
 0x356   : > { %v4327_v41 = vpop.permute.xlu0 %4326  ;;  %v4329_v52 = vpop.permute.xlu1 %4328 }
 0x357   : > { %4903 = vst.msk [vmem:[%s6567_s18 + $0x190] sm:$0xff] %vm2460_vm4, %v4327_v41  ;;  %4904 = vst.msk [vmem:[%s6567_s18 + $0x198] sm:$0xff] %vm2460_vm4, %v4329_v52 }
 0x35b   : > { %v4335_v14 = vpop.permute.xlu0 %4334  ;;  %v4337_v43 = vpop.permute.xlu1 %4336 }
 0x35c   : > { %4907 = vst.msk [vmem:[%s6567_s18 + $0x1d0] sm:$0xff] %vm2460_vm4, %v4335_v14  ;;  %4908 = vst.msk [vmem:[%s6567_s18 + $0x1d8] sm:$0xff] %vm2460_vm4, %v4337_v43 }
 0x35f   : > { %v4339_v19 = vpop.permute.xlu0 %4338  ;;  %v4341_v28 = vpop.permute.xlu1 %4340 }
 0x360   : > { %4909 = vst.msk [vmem:[%s6567_s18 + $0x1f0] sm:$0xff] %vm2460_vm4, %v4339_v19  ;;  %4910 = vst.msk [vmem:[%s6567_s18 + $0x1f8] sm:$0xff] %vm2460_vm4, %v4341_v28 }
 0x361 PF: > { %s15_s20 = sadd.s32 1, %s6088_s20   ;;  %s7418_s18 = smov %s6084_s19 }
 0x362   : > { %p12_p5 = scmp.ge.s32.totalorder %s15_s20, 4   ;;  %s7419_s19 = smov %s7421_s1 }
 0x364   :  { %14 = sbr.rel (!%p12_p5) target bundleno = 2 (0x2), region = 92 }

</bundles_post_ra>
